<compile_context>
chip_gen: v7x
topology: tpu7x:2x2x1
jax: 0.10.0
libtpu: 0.0.40
codegen_flags: <defaults>
</compile_context>

<pallas_src>
import functools

import jax
import jax.numpy as jnp
from jax import lax
from jax.experimental import pallas as pl
from jax.experimental.pallas import tpu as pltpu


# ------------------------------ small helpers ---------------------------------
def _round_up(x, m):
    return (x + m - 1) // m * m


def _pad_axis(x, axis, size):
    pad = size - x.shape[axis]
    if pad == 0:
        return x
    widths = [(0, 0)] * x.ndim
    widths[axis] = (0, pad)
    return jnp.pad(x, widths)


def _pick_batch_tile(B, cap=8, min_steps=4):
    """Largest per-step batch tile that still leaves >= min_steps grid steps."""
    bb = cap
    while bb > 1 and pl.cdiv(B, bb) < min_steps:
        bb //= 2
    return bb


# ------------------------------ shared math ------------------------------------
def _attention_block(seq_lens, mem2_b, tgt2_b, wq, wkv, wo, bo,
                     *, Bb, S_src, S_tgt, D):
    """Masked cross-attention over a block of Bb batch elements.

    seq_lens : list of Bb traced int32 scalars (read from SMEM).
    mem2_b   : (Bb*S_src, D)  bf16  encoder memory rows (flattened).
    tgt2_b   : (Bb*S_tgt, D)  bf16  target rows (flattened).
    wq       : (D, D)  bf16, 1/sqrt(D) pre-folded.
    wkv      : (D, 2D) bf16, [wk | wv] fused (N=256 MXU pass).
    wo       : (D, D)  bf16.    bo : (1, D) f32.
    returns  : (Bb, S_tgt, D) f32.
    """
    bf16, f32 = jnp.bfloat16, jnp.float32

    # Projections on flattened rows: M = Bb*S (128..512), f32 accumulation.
    q2 = jnp.dot(tgt2_b, wq, preferred_element_type=f32)         # (Bb*S_tgt, D)
    kv2 = jnp.dot(mem2_b, wkv, preferred_element_type=f32)       # (Bb*S_src, 2D)

    q3 = q2.astype(bf16).reshape(Bb, S_tgt, D)
    k3 = kv2[:, :D].astype(bf16).reshape(Bb, S_src, D)           # lane-aligned slice
    v3 = kv2[:, D:].astype(bf16).reshape(Bb, S_src, D)

    # (Bb, S_tgt, S_src) scores; batched contraction, no k transpose copy.
    scores = jnp.einsum('bqd,bkd->bqk', q3, k3, preferred_element_type=f32)

    # Per-batch sequence-length mask built from SMEM scalars (Bb is small).
    key_idx = lax.broadcasted_iota(jnp.int32, scores.shape, 2)
    batch_idx = lax.broadcasted_iota(jnp.int32, scores.shape, 0)
    lens = jnp.zeros(scores.shape, jnp.int32)
    for i in range(Bb):
        lens = jnp.where(batch_idx == i, seq_lens[i], lens)
    scores = jnp.where(key_idx < lens, scores, jnp.float32(-1e30))

    # Numerically stable softmax (f32).  exp(scores - m) is exactly 0 for
    # masked keys; denom >= 1 always (all-masked rows -> uniform average).
    m = jnp.max(scores, axis=-1, keepdims=True)
    p = jnp.exp(scores - m)
    denom = jnp.sum(p, axis=-1, keepdims=True)
    attn = p * pl.reciprocal(denom, approx=True)

    ctx = jnp.einsum('bqk,bkd->bqd', attn.astype(bf16), v3,
                     preferred_element_type=f32)                 # (Bb, S_tgt, D)
    ctx2 = ctx.reshape(Bb * S_tgt, D).astype(bf16)
    out2 = jnp.dot(ctx2, wo, preferred_element_type=f32) + bo
    return out2.reshape(Bb, S_tgt, D)


def _encoder_rows(src2_b, w_enc, b_enc):
    """src2_b: (rows, D_in) bf16; w_enc: (D_in, D) bf16; b_enc: (1, D) f32."""
    h = jnp.dot(src2_b, w_enc, preferred_element_type=jnp.float32)
    return jnp.maximum(h + b_enc, 0.0)                            # ReLU, f32


# --------------------------- fused forward kernel -------------------------------
def _fused_kernel(seq_ref, src_ref, tgt_ref, wenc_ref, benc_ref,
                  wq_ref, wkv_ref, wo_ref, bo_ref, out_ref,
                  *, Bb, S_src, S_tgt, D):
    b0 = pl.program_id(0) * Bb
    # Encoder on flattened (Bb*S_src, D_in) rows; memory stays in VMEM/vregs.
    src2 = src_ref[...].reshape(Bb * S_src, src_ref.shape[-1])
    mem2 = _encoder_rows(src2, wenc_ref[...], benc_ref[...])
    tgt2 = tgt_ref[...].reshape(Bb * S_tgt, D)
    seq_lens = [seq_ref[b0 + i] for i in range(Bb)]
    out_ref[...] = _attention_block(
        seq_lens, mem2.astype(jnp.bfloat16), tgt2,
        wq_ref[...], wkv_ref[...], wo_ref[...], bo_ref[...],
        Bb=Bb, S_src=S_src, S_tgt=S_tgt, D=D)


def forward_fused(src, sequence_lengths, tgt, enc_params, dec_params,
                  *, batch_tile=None):
    w_enc, b_enc = enc_params
    wq_s, w_kv, wo, bo = dec_params
    B, S_src, D_in = src.shape
    _, S_tgt, D = tgt.shape
    assert D_in % 128 == 0 and D % 128 == 0, "model width must be lane-dense"

    Bb = batch_tile or _pick_batch_tile(B)
    B_p = _round_up(B, Bb)
    S_src_p = _round_up(S_src, 128)     # lane-dense scores; extra keys masked
    S_tgt_p = _round_up(S_tgt, 8)

    src_b = _pad_axis(_pad_axis(src.astype(jnp.bfloat16), 1, S_src_p), 0, B_p)
    tgt_b = _pad_axis(_pad_axis(tgt.astype(jnp.bfloat16), 1, S_tgt_p), 0, B_p)
    lens = _pad_axis(sequence_lengths.astype(jnp.int32), 0, B_p)

    kernel = functools.partial(_fused_kernel, Bb=Bb, S_src=S_src_p,
                               S_tgt=S_tgt_p, D=D)
    out = pl.pallas_call(
        kernel,
        out_shape=jax.ShapeDtypeStruct((B_p, S_tgt_p, D), jnp.float32),
        grid_spec=pltpu.PrefetchScalarGridSpec(
            num_scalar_prefetch=1,          # sequence_lengths lands in SMEM
            grid=(B_p // Bb,),
            in_specs=[
                pl.BlockSpec((Bb, S_src_p, D_in), lambda b, sl: (b, 0, 0)),
                pl.BlockSpec((Bb, S_tgt_p, D), lambda b, sl: (b, 0, 0)),
                pl.BlockSpec((D_in, D), lambda b, sl: (0, 0)),
                pl.BlockSpec((1, D), lambda b, sl: (0, 0)),
                pl.BlockSpec((D, D), lambda b, sl: (0, 0)),
                pl.BlockSpec((D, 2 * D), lambda b, sl: (0, 0)),
                pl.BlockSpec((D, D), lambda b, sl: (0, 0)),
                pl.BlockSpec((1, D), lambda b, sl: (0, 0)),
            ],
            out_specs=pl.BlockSpec((Bb, S_tgt_p, D), lambda b, sl: (b, 0, 0)),
        ),
        compiler_params=pltpu.CompilerParams(
            dimension_semantics=("parallel",)),
    )(lens, src_b, tgt_b, w_enc, b_enc, wq_s, w_kv, wo, bo)
    return out[:B, :S_tgt]


# ------------------------ standalone encoder kernel -----------------------------
def _encode_kernel(src_ref, w_ref, b_ref, out_ref):
    out_ref[...] = _encoder_rows(src_ref[...], w_ref[...], b_ref[...])


def encode(src, w_enc, b_enc, *, row_tile=512):
    B, S_src, D_in = src.shape
    D = w_enc.shape[1]
    rows = B * S_src
    # Capped row tile (never tm=rows); ragged tails handled by padding.
    tm = min(row_tile, _round_up(rows, 8))
    rows_p = _round_up(rows, tm)
    src2 = _pad_axis(src.reshape(rows, D_in).astype(jnp.bfloat16), 0, rows_p)
    out = pl.pallas_call(
        _encode_kernel,
        out_shape=jax.ShapeDtypeStruct((rows_p, D), jnp.float32),
        grid_spec=pltpu.PrefetchScalarGridSpec(
            num_scalar_prefetch=0,
            grid=(rows_p // tm,),
            in_specs=[
                pl.BlockSpec((tm, D_in), lambda i: (i, 0)),
                pl.BlockSpec((D_in, D), lambda i: (0, 0)),
                pl.BlockSpec((1, D), lambda i: (0, 0)),
            ],
            out_specs=pl.BlockSpec((tm, D), lambda i: (i, 0)),
        ),
        compiler_params=pltpu.CompilerParams(
            dimension_semantics=("parallel",)),
    )(src2, w_enc, b_enc)
    return out[:rows].reshape(B, S_src, D)


# ------------------------ standalone decoder kernel -----------------------------
def _decode_kernel(seq_ref, mem_ref, tgt_ref, wq_ref, wkv_ref, wo_ref, bo_ref,
                   out_ref, *, Bb, S_src, S_tgt, D):
    b0 = pl.program_id(0) * Bb
    mem2 = mem_ref[...].reshape(Bb * S_src, D)
    tgt2 = tgt_ref[...].reshape(Bb * S_tgt, D)
    seq_lens = [seq_ref[b0 + i] for i in range(Bb)]
    out_ref[...] = _attention_block(
        seq_lens, mem2, tgt2, wq_ref[...], wkv_ref[...], wo_ref[...], bo_ref[...],
        Bb=Bb, S_src=S_src, S_tgt=S_tgt, D=D)


def decode(memory, sequence_lengths, tgt, dec_params, *, batch_tile=None):
    wq_s, w_kv, wo, bo = dec_params
    B, S_src, D = memory.shape
    _, S_tgt, _ = tgt.shape
    assert D % 128 == 0, "model width must be lane-dense"

    Bb = batch_tile or _pick_batch_tile(B)
    B_p = _round_up(B, Bb)
    S_src_p = _round_up(S_src, 128)
    S_tgt_p = _round_up(S_tgt, 8)

    mem_b = _pad_axis(_pad_axis(memory.astype(jnp.bfloat16), 1, S_src_p), 0, B_p)
    tgt_b = _pad_axis(_pad_axis(tgt.astype(jnp.bfloat16), 1, S_tgt_p), 0, B_p)
    lens = _pad_axis(sequence_lengths.astype(jnp.int32), 0, B_p)

    kernel = functools.partial(_decode_kernel, Bb=Bb, S_src=S_src_p,
                               S_tgt=S_tgt_p, D=D)
    out = pl.pallas_call(
        kernel,
        out_shape=jax.ShapeDtypeStruct((B_p, S_tgt_p, D), jnp.float32),
        grid_spec=pltpu.PrefetchScalarGridSpec(
            num_scalar_prefetch=1,
            grid=(B_p // Bb,),
            in_specs=[
                pl.BlockSpec((Bb, S_src_p, D), lambda b, sl: (b, 0, 0)),
                pl.BlockSpec((Bb, S_tgt_p, D), lambda b, sl: (b, 0, 0)),
                pl.BlockSpec((D, D), lambda b, sl: (0, 0)),
                pl.BlockSpec((D, 2 * D), lambda b, sl: (0, 0)),
                pl.BlockSpec((D, D), lambda b, sl: (0, 0)),
                pl.BlockSpec((1, D), lambda b, sl: (0, 0)),
            ],
            out_specs=pl.BlockSpec((Bb, S_tgt_p, D), lambda b, sl: (b, 0, 0)),
        ),
        compiler_params=pltpu.CompilerParams(
            dimension_semantics=("parallel",)),
    )(lens, mem_b, tgt_b, wq_s, w_kv, wo, bo)
    return out[:B, :S_tgt]


# --------------------------- EncoderDecoder wrapper -----------------------------
class EncoderDecoder:
    """JAX/Pallas analogue of the PyTorch EncoderDecoder wrapper."""

    def __init__(self, enc_params, dec_params):
        w_enc, b_enc = enc_params
        wq, wk, wv, wo, bo = dec_params
        D = wq.shape[0]
        scale = 1.0 / float(D) ** 0.5
        # Stored weights are bf16 (MXU dtype, halves weight HBM traffic).
        self.w_enc = w_enc.astype(jnp.bfloat16)
        self.b_enc = b_enc.astype(jnp.float32)
        # Fold 1/sqrt(D) into wq once (no in-kernel scale pass) and fuse
        # wk|wv into one (D, 2D) weight (N=256 MXU pass on v6e/v7x).
        self.wq_s = (wq.astype(jnp.float32) * scale).astype(jnp.bfloat16)
        self.w_kv = jnp.concatenate([wk, wv], axis=1).astype(jnp.bfloat16)
        self.wo = wo.astype(jnp.bfloat16)
        self.bo = bo.astype(jnp.float32)

    @property
    def dec_fused(self):
        return (self.wq_s, self.w_kv, self.wo, self.bo)

    def forward(self, src, sequence_lengths, tgt, mode):
        del mode  # see TODO(synk) at top of file
        # Fused path: encoder output never round-trips through HBM.
        return forward_fused(src, sequence_lengths, tgt,
                             (self.w_enc, self.b_enc), self.dec_fused)

    def encode(self, src):
        return encode(src, self.w_enc, self.b_enc)

    def decode(self, memory, sequence_lengths, tgt, mode):
        del mode
        return decode(memory, sequence_lengths, tgt, self.dec_fused)

    __call__ = forward


# ----------------------------------- main ---------------------------------------
if __name__ == "__main__":
    B, S_src, S_tgt = 16, 64, 32
    D_in, D_model = 128, 128          # lane-dense (multiple of 128)

    key = jax.random.PRNGKey(0)
    ks = jax.random.split(key, 9)

    # Deterministic synthetic parameters (no checkpoint).
    w_enc = (jax.random.normal(ks[0], (D_in, D_model), jnp.float32) * 0.1
             ).astype(jnp.bfloat16)
    b_enc = jax.random.normal(ks[1], (1, D_model), jnp.float32) * 0.1
    wq = (jax.random.normal(ks[2], (D_model, D_model), jnp.float32) * 0.1
          ).astype(jnp.bfloat16)
    wk = (jax.random.normal(ks[3], (D_model, D_model), jnp.float32) * 0.1
          ).astype(jnp.bfloat16)
    wv = (jax.random.normal(ks[4], (D_model, D_model), jnp.float32) * 0.1
          ).astype(jnp.bfloat16)
    wo = (jax.random.normal(ks[5], (D_model, D_model), jnp.float32) * 0.1
          ).astype(jnp.bfloat16)
    bo = jax.random.normal(ks[6], (1, D_model), jnp.float32) * 0.1

    # Inputs (varied per-example sequence lengths).
    src = jax.random.normal(ks[7], (B, S_src, D_in), jnp.float32)
    tgt = jax.random.normal(ks[8], (B, S_tgt, D_model), jnp.float32)
    sequence_lengths = jnp.minimum(8 + 4 * jnp.arange(B, dtype=jnp.int32), S_src)

    model = EncoderDecoder((w_enc, b_enc), (wq, wk, wv, wo, bo))

    # Fused forward (primary path).
    out = model(src, sequence_lengths, tgt, mode="train")
    out = jax.block_until_ready(out)

    # Unfused path through the public encode()/decode() API.
    mem_k = model.encode(src)
    out2 = model.decode(mem_k, sequence_lengths, tgt, mode="train")
    out2 = jax.block_until_ready(out2)

    # Pure-JAX reference mirroring the kernel's bf16-matmul / f32-accumulate
    # numerics (uses the same folded/fused weights the kernels consume).
    bf16, f32 = jnp.bfloat16, jnp.float32
    src_b, tgt_b = src.astype(bf16), tgt.astype(bf16)
    mem_ref = jnp.maximum(
        jnp.einsum("bsd,de->bse", src_b, model.w_enc,
                   preferred_element_type=f32) + model.b_enc, 0.0)
    q = jnp.einsum("btd,de->bte", tgt_b, model.wq_s, preferred_element_type=f32)
    k = jnp.einsum("bsd,de->bse", mem_ref.astype(bf16), model.w_kv[:, :D_model],
                   preferred_element_type=f32)
    v = jnp.einsum("bsd,de->bse", mem_ref.astype(bf16), model.w_kv[:, D_model:],
                   preferred_element_type=f32)
    sc = jnp.einsum("bte,bse->bts", q.astype(bf16), k.astype(bf16),
                    preferred_element_type=f32)
    mask = (jnp.arange(S_src)[None, None, :] <
            sequence_lengths[:, None, None])
    sc = jnp.where(mask, sc, jnp.float32(-1e30))
    p = jax.nn.softmax(sc, axis=-1)
    ctx = jnp.einsum("bts,bse->bte", p.astype(bf16), v.astype(bf16),
                     preferred_element_type=f32)
    ref = jnp.einsum("bte,ef->btf", ctx.astype(bf16), model.wo,
                     preferred_element_type=f32) + model.bo

    assert out.shape == (B, S_tgt, D_model)
    assert mem_k.shape == (B, S_src, D_model)
    assert jnp.allclose(mem_k, mem_ref, atol=2e-2, rtol=2e-2)
    assert jnp.allclose(out, ref, atol=2e-2, rtol=2e-2)
    assert jnp.allclose(out2, ref, atol=2e-2, rtol=2e-2)
    print("KERNEL_OK")
</pallas_src>

<mosaic_0001>
module attributes {stable_mosaic.version = 11 : i64} {
  func.func @_fused_kernel(%arg0: i32, %arg1: memref<16xi32, #tpu.memory_space<smem>>, %arg2: memref<4x128x128xbf16, #tpu.memory_space<vmem>>, %arg3: memref<4x32x128xbf16, #tpu.memory_space<vmem>>, %arg4: memref<128x128xbf16, #tpu.memory_space<vmem>>, %arg5: memref<1x128xf32, #tpu.memory_space<vmem>>, %arg6: memref<128x128xbf16, #tpu.memory_space<vmem>>, %arg7: memref<128x256xbf16, #tpu.memory_space<vmem>>, %arg8: memref<128x128xbf16, #tpu.memory_space<vmem>>, %arg9: memref<1x128xf32, #tpu.memory_space<vmem>>, %arg10: memref<4x32x128xf32, #tpu.memory_space<vmem>>) attributes {dimension_semantics = [#tpu.dimension_semantics<parallel>], iteration_bounds = array<i64: 4>, scalar_prefetch = 1 : i64, scratch_operands = 0 : i64, tpu.core_type = #tpu.core_type<tc>, window_params = [{transform_indices = @transform_0, window_bounds = array<i64: 4, 128, 128>}, {transform_indices = @transform_1, window_bounds = array<i64: 4, 32, 128>}, {pipeline_mode = #tpu.pipeline_mode<synchronous>, transform_indices = @transform_2, window_bounds = array<i64: 128, 128>}, {pipeline_mode = #tpu.pipeline_mode<synchronous>, transform_indices = @transform_3, window_bounds = array<i64: 1, 128>}, {pipeline_mode = #tpu.pipeline_mode<synchronous>, transform_indices = @transform_4, window_bounds = array<i64: 128, 128>}, {pipeline_mode = #tpu.pipeline_mode<synchronous>, transform_indices = @transform_5, window_bounds = array<i64: 128, 256>}, {pipeline_mode = #tpu.pipeline_mode<synchronous>, transform_indices = @transform_6, window_bounds = array<i64: 128, 128>}, {pipeline_mode = #tpu.pipeline_mode<synchronous>, transform_indices = @transform_7, window_bounds = array<i64: 1, 128>}, {transform_indices = @transform_8, window_bounds = array<i64: 4, 32, 128>}]} {
    %c4_i32 = arith.constant 4 : i32
    %0 = arith.muli %arg0, %c4_i32 : i32
    %c0 = arith.constant 0 : index
    %c0_0 = arith.constant 0 : index
    %c0_1 = arith.constant 0 : index
    %1 = vector.load %arg2[%c0, %c0_0, %c0_1] : memref<4x128x128xbf16, #tpu.memory_space<vmem>>, vector<4x128x128xbf16>
    %2 = vector.shape_cast %1 : vector<4x128x128xbf16> to vector<512x128xbf16>
    %c0_2 = arith.constant 0 : index
    %c0_3 = arith.constant 0 : index
    %3 = vector.load %arg4[%c0_2, %c0_3] : memref<128x128xbf16, #tpu.memory_space<vmem>>, vector<128x128xbf16>
    %c0_4 = arith.constant 0 : index
    %c0_5 = arith.constant 0 : index
    %4 = vector.load %arg5[%c0_4, %c0_5] : memref<1x128xf32, #tpu.memory_space<vmem>>, vector<1x128xf32>
    %cst = arith.constant dense<0.000000e+00> : vector<512x128xf32>
    %5 = tpu.matmul %2, %3, %cst {dimension_numbers = #tpu.dot_dimension_numbers<[1], [0], [0], [1], [0, 0, 1, 1], [], []>} : vector<512x128xbf16>, vector<128x128xbf16>, vector<512x128xf32> -> vector<512x128xf32>
    %6 = vector.broadcast %4 : vector<1x128xf32> to vector<512x128xf32>
    %7 = arith.addf %5, %6 : vector<512x128xf32>
    %cst_6 = arith.constant 0.000000e+00 : f32
    %8 = vector.broadcast %cst_6 : f32 to vector<512x128xf32>
    %9 = arith.maximumf %7, %8 : vector<512x128xf32>
    %c0_7 = arith.constant 0 : index
    %c0_8 = arith.constant 0 : index
    %c0_9 = arith.constant 0 : index
    %10 = vector.load %arg3[%c0_7, %c0_8, %c0_9] : memref<4x32x128xbf16, #tpu.memory_space<vmem>>, vector<4x32x128xbf16>
    %11 = vector.shape_cast %10 : vector<4x32x128xbf16> to vector<128x128xbf16>
    %c0_i32 = arith.constant 0 : i32
    %12 = arith.addi %0, %c0_i32 : i32
    %13 = arith.index_cast %12 : i32 to index
    %14 = memref.load %arg1[%13] : memref<16xi32, #tpu.memory_space<smem>>
    %c1_i32 = arith.constant 1 : i32
    %15 = arith.addi %0, %c1_i32 : i32
    %16 = arith.index_cast %15 : i32 to index
    %17 = memref.load %arg1[%16] : memref<16xi32, #tpu.memory_space<smem>>
    %c2_i32 = arith.constant 2 : i32
    %18 = arith.addi %0, %c2_i32 : i32
    %19 = arith.index_cast %18 : i32 to index
    %20 = memref.load %arg1[%19] : memref<16xi32, #tpu.memory_space<smem>>
    %c3_i32 = arith.constant 3 : i32
    %21 = arith.addi %0, %c3_i32 : i32
    %22 = arith.index_cast %21 : i32 to index
    %23 = memref.load %arg1[%22] : memref<16xi32, #tpu.memory_space<smem>>
    %24 = arith.truncf %9 : vector<512x128xf32> to vector<512x128xbf16>
    %c0_10 = arith.constant 0 : index
    %c0_11 = arith.constant 0 : index
    %25 = vector.load %arg6[%c0_10, %c0_11] : memref<128x128xbf16, #tpu.memory_space<vmem>>, vector<128x128xbf16>
    %c0_12 = arith.constant 0 : index
    %c0_13 = arith.constant 0 : index
    %26 = vector.load %arg7[%c0_12, %c0_13] : memref<128x256xbf16, #tpu.memory_space<vmem>>, vector<128x256xbf16>
    %c0_14 = arith.constant 0 : index
    %c0_15 = arith.constant 0 : index
    %27 = vector.load %arg8[%c0_14, %c0_15] : memref<128x128xbf16, #tpu.memory_space<vmem>>, vector<128x128xbf16>
    %c0_16 = arith.constant 0 : index
    %c0_17 = arith.constant 0 : index
    %28 = vector.load %arg9[%c0_16, %c0_17] : memref<1x128xf32, #tpu.memory_space<vmem>>, vector<1x128xf32>
    %cst_18 = arith.constant dense<0.000000e+00> : vector<128x128xf32>
    %29 = tpu.matmul %11, %25, %cst_18 {dimension_numbers = #tpu.dot_dimension_numbers<[1], [0], [0], [1], [0, 0, 1, 1], [], []>} : vector<128x128xbf16>, vector<128x128xbf16>, vector<128x128xf32> -> vector<128x128xf32>
    %cst_19 = arith.constant dense<0.000000e+00> : vector<512x256xf32>
    %30 = tpu.matmul %24, %26, %cst_19 {dimension_numbers = #tpu.dot_dimension_numbers<[1], [0], [0], [1], [0, 0, 1, 1], [], []>} : vector<512x128xbf16>, vector<128x256xbf16>, vector<512x256xf32> -> vector<512x256xf32>
    %31 = arith.truncf %29 : vector<128x128xf32> to vector<128x128xbf16>
    %32 = vector.shape_cast %31 : vector<128x128xbf16> to vector<4x32x128xbf16>
    %33 = vector.extract_strided_slice %30 {offsets = [0, 0], sizes = [512, 128], strides = [1, 1]} : vector<512x256xf32> to vector<512x128xf32>
    %34 = arith.truncf %33 : vector<512x128xf32> to vector<512x128xbf16>
    %35 = vector.shape_cast %34 : vector<512x128xbf16> to vector<4x128x128xbf16>
    %36 = vector.extract_strided_slice %30 {offsets = [0, 128], sizes = [512, 128], strides = [1, 1]} : vector<512x256xf32> to vector<512x128xf32>
    %37 = arith.truncf %36 : vector<512x128xf32> to vector<512x128xbf16>
    %38 = vector.shape_cast %37 : vector<512x128xbf16> to vector<4x128x128xbf16>
    "tpu.trace_start"() <{level = 10 : i32, message = "bqd,bkd->bqk"}> : () -> ()
    %cst_20 = arith.constant dense<0.000000e+00> : vector<4x32x128xf32>
    %39 = tpu.matmul %32, %35, %cst_20 {dimension_numbers = #tpu.dot_dimension_numbers<[2], [2], [1], [1], [0, 0, 0, 1, 1, 1], [0], [0]>} : vector<4x32x128xbf16>, vector<4x128x128xbf16>, vector<4x32x128xf32> -> vector<4x32x128xf32>
    "tpu.trace_stop"() : () -> ()
    %40 = tpu.iota {dimensions = array<i32: 2>} : vector<4x32x128xi32>
    %41 = tpu.iota {dimensions = array<i32: 0>} : vector<4x32x128xi32>
    %c0_i32_21 = arith.constant 0 : i32
    %42 = vector.broadcast %c0_i32_21 : i32 to vector<4x32x128xi32>
    %c0_i32_22 = arith.constant 0 : i32
    %43 = vector.broadcast %c0_i32_22 : i32 to vector<4x32x128xi32>
    %44 = arith.cmpi eq, %41, %43 : vector<4x32x128xi32>
    %45 = vector.broadcast %14 : i32 to vector<4x32x128xi32>
    %46 = arith.select %44, %45, %42 : vector<4x32x128xi1>, vector<4x32x128xi32>
    %c1_i32_23 = arith.constant 1 : i32
    %47 = vector.broadcast %c1_i32_23 : i32 to vector<4x32x128xi32>
    %48 = arith.cmpi eq, %41, %47 : vector<4x32x128xi32>
    %49 = vector.broadcast %17 : i32 to vector<4x32x128xi32>
    %50 = arith.select %48, %49, %46 : vector<4x32x128xi1>, vector<4x32x128xi32>
    %c2_i32_24 = arith.constant 2 : i32
    %51 = vector.broadcast %c2_i32_24 : i32 to vector<4x32x128xi32>
    %52 = arith.cmpi eq, %41, %51 : vector<4x32x128xi32>
    %53 = vector.broadcast %20 : i32 to vector<4x32x128xi32>
    %54 = arith.select %52, %53, %50 : vector<4x32x128xi1>, vector<4x32x128xi32>
    %c3_i32_25 = arith.constant 3 : i32
    %55 = vector.broadcast %c3_i32_25 : i32 to vector<4x32x128xi32>
    %56 = arith.cmpi eq, %41, %55 : vector<4x32x128xi32>
    %57 = vector.broadcast %23 : i32 to vector<4x32x128xi32>
    %58 = arith.select %56, %57, %54 : vector<4x32x128xi1>, vector<4x32x128xi32>
    %59 = arith.cmpi slt, %40, %58 : vector<4x32x128xi32>
    %cst_26 = arith.constant -1.000000e+30 : f32
    %60 = vector.broadcast %cst_26 : f32 to vector<4x32x128xf32>
    %61 = arith.select %59, %39, %60 : vector<4x32x128xi1>, vector<4x32x128xf32>
    %cst_27 = arith.constant dense<0xFF800000> : vector<4x32xf32>
    %62 = vector.multi_reduction <maximumf>, %61, %cst_27 [2] : vector<4x32x128xf32> to vector<4x32xf32>
    %63 = vector.shape_cast %62 : vector<4x32xf32> to vector<4x32x1xf32>
    %64 = vector.broadcast %63 : vector<4x32x1xf32> to vector<4x32x128xf32>
    %65 = arith.subf %61, %64 : vector<4x32x128xf32>
    %66 = math.exp %65 : vector<4x32x128xf32>
    %cst_28 = arith.constant dense<0.000000e+00> : vector<4x32xf32>
    %67 = vector.multi_reduction <add>, %66, %cst_28 [2] : vector<4x32x128xf32> to vector<4x32xf32>
    %68 = vector.shape_cast %67 : vector<4x32xf32> to vector<4x32x1xf32>
    %69 = tpu.reciprocal %68 {approx = true} : vector<4x32x1xf32> -> vector<4x32x1xf32>
    %70 = vector.broadcast %69 : vector<4x32x1xf32> to vector<4x32x128xf32>
    %71 = arith.mulf %66, %70 : vector<4x32x128xf32>
    %72 = arith.truncf %71 : vector<4x32x128xf32> to vector<4x32x128xbf16>
    "tpu.trace_start"() <{level = 10 : i32, message = "bqk,bkd->bqd"}> : () -> ()
    %cst_29 = arith.constant dense<0.000000e+00> : vector<4x32x128xf32>
    %73 = tpu.matmul %72, %38, %cst_29 {dimension_numbers = #tpu.dot_dimension_numbers<[2], [1], [1], [2], [0, 0, 0, 1, 1, 2], [0], [0]>} : vector<4x32x128xbf16>, vector<4x128x128xbf16>, vector<4x32x128xf32> -> vector<4x32x128xf32>
    "tpu.trace_stop"() : () -> ()
    %74 = vector.shape_cast %73 : vector<4x32x128xf32> to vector<128x128xf32>
    %75 = arith.truncf %74 : vector<128x128xf32> to vector<128x128xbf16>
    %cst_30 = arith.constant dense<0.000000e+00> : vector<128x128xf32>
    %76 = tpu.matmul %75, %27, %cst_30 {dimension_numbers = #tpu.dot_dimension_numbers<[1], [0], [0], [1], [0, 0, 1, 1], [], []>} : vector<128x128xbf16>, vector<128x128xbf16>, vector<128x128xf32> -> vector<128x128xf32>
    %77 = vector.broadcast %28 : vector<1x128xf32> to vector<128x128xf32>
    %78 = arith.addf %76, %77 : vector<128x128xf32>
    %79 = vector.shape_cast %78 : vector<128x128xf32> to vector<4x32x128xf32>
    %c0_31 = arith.constant 0 : index
    %c0_32 = arith.constant 0 : index
    %c0_33 = arith.constant 0 : index
    %80 = vector.load %arg10[%c0_31, %c0_32, %c0_33] : memref<4x32x128xf32, #tpu.memory_space<vmem>>, vector<4x32x128xf32>
    tpu.vector_store %arg10[%c0_31, %c0_32, %c0_33], %79 {strides = array<i32>} : memref<4x32x128xf32, #tpu.memory_space<vmem>>, vector<4x32x128xf32>,
    return
  }
  func.func @transform_0(%arg0: i32, %arg1: memref<16xi32, #tpu.memory_space<smem>>) -> (i32, i32, i32) {
    %c0_i32 = arith.constant 0 : i32
    %c0_i32_0 = arith.constant 0 : i32
    %c0_i32_1 = arith.constant 0 : i32
    return %arg0, %c0_i32, %c0_i32_0 : i32, i32, i32
  }
  func.func @transform_1(%arg0: i32, %arg1: memref<16xi32, #tpu.memory_space<smem>>) -> (i32, i32, i32) {
    %c0_i32 = arith.constant 0 : i32
    %c0_i32_0 = arith.constant 0 : i32
    %c0_i32_1 = arith.constant 0 : i32
    return %arg0, %c0_i32, %c0_i32_0 : i32, i32, i32
  }
  func.func @transform_2(%arg0: i32, %arg1: memref<16xi32, #tpu.memory_space<smem>>) -> (i32, i32) {
    %c0_i32 = arith.constant 0 : i32
    %c0_i32_0 = arith.constant 0 : i32
    %c0_i32_1 = arith.constant 0 : i32
    return %c0_i32, %c0_i32_0 : i32, i32
  }
  func.func @transform_3(%arg0: i32, %arg1: memref<16xi32, #tpu.memory_space<smem>>) -> (i32, i32) {
    %c0_i32 = arith.constant 0 : i32
    %c0_i32_0 = arith.constant 0 : i32
    %c0_i32_1 = arith.constant 0 : i32
    return %c0_i32, %c0_i32_0 : i32, i32
  }
  func.func @transform_4(%arg0: i32, %arg1: memref<16xi32, #tpu.memory_space<smem>>) -> (i32, i32) {
    %c0_i32 = arith.constant 0 : i32
    %c0_i32_0 = arith.constant 0 : i32
    %c0_i32_1 = arith.constant 0 : i32
    return %c0_i32, %c0_i32_0 : i32, i32
  }
  func.func @transform_5(%arg0: i32, %arg1: memref<16xi32, #tpu.memory_space<smem>>) -> (i32, i32) {
    %c0_i32 = arith.constant 0 : i32
    %c0_i32_0 = arith.constant 0 : i32
    %c0_i32_1 = arith.constant 0 : i32
    return %c0_i32, %c0_i32_0 : i32, i32
  }
  func.func @transform_6(%arg0: i32, %arg1: memref<16xi32, #tpu.memory_space<smem>>) -> (i32, i32) {
    %c0_i32 = arith.constant 0 : i32
    %c0_i32_0 = arith.constant 0 : i32
    %c0_i32_1 = arith.constant 0 : i32
    return %c0_i32, %c0_i32_0 : i32, i32
  }
  func.func @transform_7(%arg0: i32, %arg1: memref<16xi32, #tpu.memory_space<smem>>) -> (i32, i32) {
    %c0_i32 = arith.constant 0 : i32
    %c0_i32_0 = arith.constant 0 : i32
    %c0_i32_1 = arith.constant 0 : i32
    return %c0_i32, %c0_i32_0 : i32, i32
  }
  func.func @transform_8(%arg0: i32, %arg1: memref<16xi32, #tpu.memory_space<smem>>) -> (i32, i32, i32) {
    %c0_i32 = arith.constant 0 : i32
    %c0_i32_0 = arith.constant 0 : i32
    %c0_i32_1 = arith.constant 0 : i32
    return %arg0, %c0_i32, %c0_i32_0 : i32, i32, i32
  }
}

</mosaic_0001>

<bundles_post_ra>
// kernel: tpu_custom_call.1
= control target key start
LH: loop header
LB: loop body
LE: loop exit
PB: predicated region body
PF: predicated region fallthrough
CT: control target
= control target key end

     0   :  { %s4886_s0 = inlined_call_operand.hbm [shape: s32[16], index: 0, kind: input, shape index: {}]   ;;  %s4887_s1 = inlined_call_operand.hbm [shape: bf16[16,128,128], index: 1, kind: input, shape index: {}]   ;;  %s4888_s2 = inlined_call_operand.hbm [shape: bf16[16,32,128], index: 2, kind: input, shape index: {}]   ;;  %s4889_s3 = inlined_call_operand.hbm [shape: bf16[128,128], index: 3, kind: input, shape index: {}]   ;;  %s4890_s4 = inlined_call_operand.vmem [shape: f32[1,128], index: 4, kind: input, shape index: {}]   ;;  %s4891_s5 = inlined_call_operand.hbm [shape: bf16[128,128], index: 5, kind: input, shape index: {}]   ;;  %s4892_s6 = inlined_call_operand.hbm [shape: bf16[128,256], index: 6, kind: input, shape index: {}]   ;;  %s4893_s7 = inlined_call_operand.hbm [shape: bf16[128,128], index: 7, kind: input, shape index: {}]   ;;  %s4894_s8 = inlined_call_operand.vmem [shape: f32[1,128], index: 8, kind: input, shape index: {}]   ;;  %s4895_s9 = inlined_call_operand.hbm [shape: f32[16,32,128], index: 9, kind: output, shape index: {}]  }
   0x1   :  { %4905 = sst [smem:[#allocation25_spill]] %s4887_s1  ;;  %s3636_s11 = scalar_lea.hbm %s4886_s0, 16 }
   0x2   :  { %4906 = sst [smem:[#allocation26_spill]] %s4889_s3  ;;  %p3637_p0 = scmp.ne.s32.totalorder %s4886_s0, %s3636_s11 }
   0x3   :  { %4907 = sst [smem:[#allocation27_spill]] %s4891_s5  ;;  %p3640_p1 = scmp.lt.u32.totalorder %s3636_s11, %s4886_s0 }
   0x4   :  { %4908 = sst [smem:[#allocation28_spill]] %s4892_s6 }
   0x5   :  { %p3642_p2 = pnand %p3640_p1, %p3637_p0 }
   0x7   :  { %3645 = shalt.err (!%p3642_p2)  }
   0x8   :  { %s3904_s16 = smov [#allocation3]  }
   0x9   :  { %15 = dma.hbm_to_smem %s4886_s0, 16, %s3904_s16, [#allocation2] }
   0xa   :  { %3862 = dma.done.wait [#allocation2], 16 }
   0xb   :  { %3863 = vsyncadd [#allocation2], 4294967280 }
   0xc   :  { %17 = sfence }
   0xd   :  { %18 = vsyncpa [#allocation5], 0 }
   0xe   :  { %20 = vsyncpa [#allocation5 + $0x1], 0 }
   0xf   :  { %21 = vsyncpa [#allocation8], 0 }
  0x10   :  { %23 = vsyncpa [#allocation8 + $0x1], 0 }
  0x11   :  { %24 = vsyncpa [#allocation11], 0 }
  0x12   :  { %25 = vsyncpa [#allocation14], 0 }
  0x13   :  { %26 = vsyncpa [#allocation6], 0 }
  0x14   :  { %28 = vsyncpa [#allocation6 + $0x1], 0  ;;  %s3981_s19 = smov 0   ;;  %s3983_s20 = smov 0  }
  0x15   :  { %s3985_s21 = smov 0   ;;  %s3987_s22 = smov 0  }
  0x16 LB: > { %4909 = sst [smem:[#allocation23_spill]] %s3890_s19  ;;  %s4002_s0 = sadd.s32 4294967295, %s3902_s22   ;;  %s3902_s22 = sphi %s3987_s22, %s4942_s22   ;;  %s3898_s21 = sphi %s3985_s21, %s4941_s21   ;;  %s3894_s20 = sphi %s3983_s20, %s4940_s20   ;;  %s3890_s19 = sphi %s3981_s19, %s4939_s19  }
  0x17   : > { %s2810_s23 = sadd.s32 4294967294, %s3902_s22   ;;  %p54_p3 = scmp.ne.s32.totalorder %s3894_s20, %s3890_s19 }
  0x18   : > { %p4896_p4 = scmp.eq.s32.totalorder %s4002_s0, 0  ;;  %p236_p6 = scmp.eq.s32.totalorder %s2810_s23, 3 }
  0x19   : > { %p2811_p8 = scmp.ge.s32.totalorder %s3902_s22, 1  ;;  %p243_p10 = scmp.lt.s32.totalorder %s3902_s22, 5 }
  0x1a   : > { %p4011_p7 = por %p4896_p4, %p54_p3  ;;  %p4016_p9 = por %p236_p6, %p54_p3 }
  0x1b   : > { %p4021_p11 = pnand %p2811_p8, %p243_p10  ;;  %s3905_s27 = smov [#allocation9]  }
  0x1c   : > { %s4910_s24 = scalar_select %p4011_p7, 1, 0 }
  0x1d   : > { %s4911_s25 = scalar_select %p4016_p9, 1, 0 }
  0x1e   : > { %s4913_s26 = scalar_select %p4021_p11, 1, 0 }
  0x1f   : > { %4912 = sst [smem:[#allocation24_spill]] %s4911_s25  ;;  %s255_s28 = sshll.u32 %s3905_s27, 4  ;;  %s4025_s28 = int_to_ptr.vmem [resolvable:$true] %s255_s28 }
  0x20   : > { %p3406_p12 = pneg %p4021_p11  ;;  %s3906_s30 = smov [#allocation10]  }
  0x21   : > { %s271_s10 = sshll.u32 %s3906_s30, 4  ;;  %s3907_s11 = smov [#allocation12]   ;;  %s4035_s10 = int_to_ptr.vmem [resolvable:$true] %s271_s10 }
  0x22   : > { %p4031_p13 = pnand %p3406_p12, %p4896_p4  ;;  %s4037_s12 = sshll.u32 %s3907_s11, 4  ;;  %s285_s12 = int_to_ptr.vmem [resolvable:$true] %s4037_s12 }
  0x23   : > { %s4915_s3 = sld [smem:[#allocation26_spill]] }
  0x24   : > { %p4047_p1 = pneg %p4031_p13 }
  0x29   : > { %s3646_s15 = scalar_lea.hbm %s4915_s3, 1024 }
  0x2a   : > { %p3647_p0 = scmp.ne.s32.totalorder %s4915_s3, %s3646_s15  ;;  %p3653_p6 = scmp.lt.u32.totalorder %s3646_s15, %s4915_s3 }
  0x2c   : > { %p3649_p2 = pnand %p4047_p1, %p3647_p0 }
  0x2e   : > { %p3650_p3 = pneg %p3649_p2 }
  0x30   : > { %p3655_p8 = pnand %p3653_p6, %p3650_p3 }
  0x32   : > { %3658 = shalt.err (!%p3655_p8)
}
  0x33   : > { %s3659_s30 = scalar_lea.vmem %s4025_s28, 1024  ;;  %p3667_p5 = scmp.lt.s32.totalorder %s4025_s28, %s4025_s28 }
  0x34   : > { %p3660_p10 = scmp.ne.s32.totalorder %s4025_s28, %s3659_s30  ;;  %p3668_p9 = scmp.lt.s32.totalorder %s3659_s30, %s3659_s30 }
  0x36   : > { %p3662_p12 = pnand %p3660_p10, %p4047_p1  ;;  %p3669_p0 = por %p3668_p9, %p3667_p5 }
  0x38   : > { %p3663_p4 = pneg %p3662_p12 }
  0x3a   : > { %p3670_p2 = pnand %p3669_p0, %p3663_p4 }
  0x3c   : > { %3673 = shalt.err (!%p3670_p2)
}
  0x3d   : > { %s4901_s11 = smov 64   ;;  %s4903_s13 = smov 4  }
  0x3e   : > { %3409 = dma.hbm_to_vmem [thread:$0]  (!%p4031_p13), %s4915_s3, 1024, %s4025_s28, [#allocation8], %s4901_s11, %s4901_s11, %s4903_s13  }
  0x3f   : > { %s4917_s5 = sld [smem:[#allocation27_spill]] }
  0x45   : > { %s3674_s23 = scalar_lea.hbm %s4917_s5, 1024 }
  0x46   : > { %p3675_p4 = scmp.ne.s32.totalorder %s4917_s5, %s3674_s23  ;;  %p3681_p3 = scmp.lt.u32.totalorder %s3674_s23, %s4917_s5 }
  0x48   : > { %p3677_p5 = pnand %p3675_p4, %p4047_p1 }
  0x4a   : > { %p3678_p9 = pneg %p3677_p5 }
  0x4c   : > { %p3683_p6 = pnand %p3681_p3, %p3678_p9 }
  0x4e   : > { %3686 = shalt.err (!%p3683_p6)
}
  0x4f   : > { %s3687_s28 = scalar_lea.vmem %s4035_s10, 1024  ;;  %p3695_p0 = scmp.lt.s32.totalorder %s4035_s10, %s4035_s10 }
  0x50   : > { %p3688_p8 = scmp.ne.s32.totalorder %s4035_s10, %s3687_s28  ;;  %p3696_p2 = scmp.lt.s32.totalorder %s3687_s28, %s3687_s28 }
  0x52   : > { %p3690_p10 = pnand %p3688_p8, %p4047_p1  ;;  %p3697_p4 = por %p3696_p2, %p3695_p0 }
  0x54   : > { %p3691_p12 = pneg %p3690_p10 }
  0x56   : > { %p3698_p5 = pnand %p3697_p4, %p3691_p12 }
  0x58   : > { %3701 = shalt.err (!%p3698_p5)
}
  0x59   : > { %3412 = dma.hbm_to_vmem [thread:$0]  (!%p4031_p13), %s4917_s5, 1024, %s4035_s10, [#allocation11], %s4901_s11, %s4901_s11, %s4903_s13  }
  0x5a   : > { %s4918_s6 = sld [smem:[#allocation28_spill]] }
  0x60   : > { %s3702_s16 = scalar_lea.hbm %s4918_s6, 2048 }
  0x61   : > { %p3703_p9 = scmp.ne.s32.totalorder %s4918_s6, %s3702_s16  ;;  %p3709_p8 = scmp.lt.u32.totalorder %s3702_s16, %s4918_s6 }
  0x63   : > { %p3705_p3 = pnand %p3703_p9, %p4047_p1 }
  0x65   : > { %p3706_p6 = pneg %p3705_p3 }
  0x67   : > { %p3711_p10 = pnand %p3709_p8, %p3706_p6 }
  0x69   : > { %3714 = shalt.err (!%p3711_p10)
}
  0x6a   : > { %s3715_s28 = scalar_lea.vmem %s285_s12, 2048  ;;  %p3723_p4 = scmp.lt.s32.totalorder %s285_s12, %s285_s12 }
  0x6b   : > { %p3716_p12 = scmp.ne.s32.totalorder %s285_s12, %s3715_s28  ;;  %p3724_p5 = scmp.lt.s32.totalorder %s3715_s28, %s3715_s28 }
  0x6d   : > { %p3718_p0 = pnand %p3716_p12, %p4047_p1  ;;  %p3725_p7 = por %p3724_p5, %p3723_p4 }
  0x6f   : > { %p3719_p2 = pneg %p3718_p0 }
  0x71   : > { %p3726_p11 = pnand %p3725_p7, %p3719_p2 }
  0x73   : > { %3729 = shalt.err (!%p3726_p11)
}
  0x74   : > { %s3910_s10 = smov 128   ;;  %s3911_s19 = smov 8  }
  0x75   : > { %3415 = dma.hbm_to_vmem [thread:$0]  (!%p4031_p13), %s4918_s6, 2048, %s285_s12, [#allocation11], %s3910_s10, %s3910_s10, %s3911_s19  }
  0x76   : > { %s3912_s15 = smov [#allocation13]   ;;  %s3730_s27 = scalar_lea.hbm %s4893_s7, 1024 }
  0x77   : > { %s297_s16 = sshll.u32 %s3912_s15, 4  ;;  %p3731_p7 = scmp.ne.s32.totalorder %s4893_s7, %s3730_s27  ;;  %s298_s16 = int_to_ptr.vmem [resolvable:$true] %s297_s16 }
  0x78   : > { %p3737_p3 = scmp.lt.u32.totalorder %s3730_s27, %s4893_s7 }
  0x79   : > { %p3733_p11 = pnand %p3731_p7, %p4047_p1 }
  0x7b   : > { %p3734_p9 = pneg %p3733_p11 }
  0x7d   : > { %p3739_p6 = pnand %p3737_p3, %p3734_p9 }
  0x7f   : > { %3742 = shalt.err (!%p3739_p6)
}
  0x80   : > { %s3743_s12 = scalar_lea.vmem %s298_s16, 1024  ;;  %p3751_p0 = scmp.lt.s32.totalorder %s298_s16, %s298_s16 }
  0x81   : > { %p3744_p8 = scmp.ne.s32.totalorder %s298_s16, %s3743_s12  ;;  %p3752_p2 = scmp.lt.s32.totalorder %s3743_s12, %s3743_s12 }
  0x83   : > { %p3746_p10 = pnand %p3744_p8, %p4047_p1  ;;  %p3753_p4 = por %p3752_p2, %p3751_p0 }
  0x85   : > { %p3747_p12 = pneg %p3746_p10 }
  0x87   : > { %p3754_p5 = pnand %p3753_p4, %p3747_p12 }
  0x89   : > { %3757 = shalt.err (!%p3754_p5)
}
  0x8a   : > { %s4919_s10 = smov 4   ;;  %s4920_s19 = smov 64  }
  0x8b   : > { %3418 = dma.hbm_to_vmem [thread:$0]  (!%p4031_p13), %s4893_s7, 1024, %s298_s16, [#allocation14], %s4920_s19, %s4920_s19, %s4919_s10  }
  0x8c   : > { %s4138_s18 = sadd.s32 1, %s3902_s22   ;;  %s41_s29 = sadd.s32 1, %s3898_s21 }
  0x8d   : > { %s38_s25 = ssub.s32 %s3902_s22, %s4138_s18  ;;  %p48_p1 = scmp.ne.s32.totalorder %s3898_s21, %s3894_s20 }
  0x8e   : > { %p39_p7 = scmp.eq.s32.totalorder %s38_s25, 0  ;;  %p49_p11 = scmp.eq.s32.totalorder %s3902_s22, 0 }
  0x8f   : > { %p4921_p9 = scmp.eq.s32.totalorder %s4002_s0, 3  ;;  %p3434_p6 = scmp.lt.s32.totalorder %s3902_s22, 4 }
  0x90   : > { %s4154_s15 = scalar_select %p39_p7, %s3898_s21, %s41_s29  }
  0x91   : > { %p4148_p3 = por %p4921_p9, %p48_p1  ;;  %p50_p8 = por %p49_p11, %p48_p1 }
  0x92   : > { %s4157_s17 = sand.u32 1, %s3898_s21   ;;  %s2923_s23 = sshll.u32 %s3902_s22, 12 }
  0x93   : > { %s2817_s16 = sshll.u32 %s4157_s17, 8  ;;  %s4923_s1 = sld [smem:[#allocation25_spill]] }
  0x94   : > { %s318_s12 = scalar_lea.vmem [#allocation4], %s2817_s16  ;;  %p4168_p13 = pnand %p3434_p6, %p50_p8 }
  0x95   : > { %s326_s11 = sshll.u32 %s318_s12, 4  ;;  %s2821_s25 = sshll.u32 %s4157_s17, 6  ;;  %s4166_s11 = int_to_ptr.vmem [resolvable:$true] %s326_s11 }
  0x96   : > { %s315_s3 = scalar_lea.sflag [#allocation5], %s4157_s17  ;;  %p3760_p12 = pneg %p4168_p13 }
  0x99   : > { %s4164_s28 = scalar_lea.hbm %s4923_s1, %s2923_s23  ;;  %s3763_s30 = scalar_lea.hbm %s4923_s1, 16384 }
  0x9a   : > { %s3758_s27 = scalar_lea.hbm %s4164_s28, 4096  ;;  %p3764_p4 = scmp.lt.u32.totalorder %s4164_s28, %s4923_s1 }
  0x9b   : > { %p3759_p10 = scmp.ne.s32.totalorder %s4164_s28, %s3758_s27  ;;  %p3765_p5 = scmp.lt.u32.totalorder %s3763_s30, %s3758_s27 }
  0x9c   : > { %p3767_p7 = scmp.lt.u32.totalorder %s3758_s27, %s4164_s28 }
  0x9d   : > { %p3761_p0 = pnand %p3760_p12, %p3759_p10  ;;  %p3766_p1 = por %p3765_p5, %p3764_p4 }
  0x9f   : > { %p3762_p2 = pneg %p3761_p0  ;;  %p3768_p11 = por %p3767_p7, %p3766_p1 }
  0xa1   : > { %p3769_p9 = pnand %p3768_p11, %p3762_p2 }
  0xa3   : > { %3772 = shalt.err (!%p3769_p9)
}
  0xa4   : > { %s3773_s29 = scalar_lea.vmem %s4166_s11, 4096  ;;  %s3913_s16 = smov [#allocation4]  }
  0xa5   : > { %p3774_p6 = scmp.ne.s32.totalorder %s4166_s11, %s3773_s29  ;;  %s3778_s23 = sshll.u32 %s3913_s16, 4  ;;  %s3779_s23 = int_to_ptr.vmem [resolvable:$false] %s3778_s23 }
  0xa6   : > { %s3780_s5 = scalar_lea.vmem %s3779_s23, 8192  ;;  %p3781_p0 = scmp.lt.s32.totalorder %s4166_s11, %s3779_s23 }
  0xa7   : > { %p3776_p8 = pnand %p3774_p6, %p3760_p12  ;;  %p3782_p4 = scmp.lt.s32.totalorder %s3780_s5, %s3773_s29 }
  0xa9   : > { %p3777_p10 = pneg %p3776_p8  ;;  %p3783_p5 = por %p3782_p4, %p3781_p0 }
  0xab   : > { %p3784_p1 = pnand %p3783_p5, %p3777_p10 }
  0xad   : > { %3787 = shalt.err (!%p3784_p1)
}
  0xae   : > { %3422 = dma.hbm_to_vmem [thread:$0]  (!%p4168_p13), %s4164_s28, 4096, %s4166_s11, %s315_s3, %s4920_s19, %s4920_s19, %s4919_s10  }
  0xaf   : > { %s2925_s27 = sshll.u32 %s3902_s22, 10  ;;  %s340_s16 = scalar_lea.vmem [#allocation7], %s2821_s25 }
  0xb0   : > { %s4209_s12 = scalar_lea.hbm %s4888_s2, %s2925_s27  ;;  %s348_s23 = sshll.u32 %s340_s16, 4  ;;  %s4213_s23 = int_to_ptr.vmem [resolvable:$true] %s348_s23 }
  0xb1   : > { %s4925_s5 = sand.u32 1, %s3902_s22   ;;  %s3788_s6 = scalar_lea.hbm %s4209_s12, 1024 }
  0xb2   : > { %s4217_s1 = scalar_lea.sflag [#allocation8], %s4925_s5  ;;  %p3789_p2 = scmp.ne.s32.totalorder %s4209_s12, %s3788_s6 }
  0xb3   : > { %s3793_s17 = scalar_lea.hbm %s4888_s2, 4096  ;;  %p3794_p9 = scmp.lt.u32.totalorder %s4209_s12, %s4888_s2 }
  0xb4   : > { %p3791_p7 = pnand %p3789_p2, %p3760_p12  ;;  %p3795_p6 = scmp.lt.u32.totalorder %s3793_s17, %s3788_s6 }
  0xb5   : > { %p3797_p10 = scmp.lt.u32.totalorder %s3788_s6, %s4209_s12 }
  0xb6   : > { %p3792_p11 = pneg %p3791_p7  ;;  %p3796_p8 = por %p3795_p6, %p3794_p9 }
  0xb8   : > { %p3798_p0 = por %p3797_p10, %p3796_p8 }
  0xba   : > { %p3799_p4 = pnand %p3798_p0, %p3792_p11 }
  0xbc   : > { %3802 = shalt.err (!%p3799_p4)
}
  0xbd   : > { %s3803_s25 = scalar_lea.vmem %s4213_s23, 1024  ;;  %s3914_s30 = smov [#allocation7]  }
  0xbe   : > { %p3804_p5 = scmp.ne.s32.totalorder %s4213_s23, %s3803_s25  ;;  %s3808_s29 = sshll.u32 %s3914_s30, 4  ;;  %s3809_s29 = int_to_ptr.vmem [resolvable:$false] %s3808_s29 }
  0xbf   : > { %s3810_s16 = scalar_lea.vmem %s3809_s29, 2048  ;;  %p3811_p7 = scmp.lt.s32.totalorder %s4213_s23, %s3809_s29 }
  0xc0   : > { %p3806_p1 = pnand %p3804_p5, %p3760_p12  ;;  %p3812_p9 = scmp.lt.s32.totalorder %s3810_s16, %s3803_s25 }
  0xc2   : > { %p3807_p2 = pneg %p3806_p1  ;;  %p3813_p6 = por %p3812_p9, %p3811_p7 }
  0xc4   : > { %p3814_p8 = pnand %p3813_p6, %p3807_p2 }
  0xc6   : > { %3817 = shalt.err (!%p3814_p8)
}
  0xc7   : > { %3425 = dma.hbm_to_vmem [thread:$0]  (!%p4168_p13), %s4209_s12, 1024, %s4213_s23, %s4217_s1, %s4920_s19, %s4920_s19, %s4919_s10  }
  0xc8   : > { %p4926_p12 = scmp.ne.s32.totalorder %s4913_s26, 0 }
  0xc9   : > { %s4249_s6 = sand.u32 (!%p4926_p12), 1, %s3894_s20   ;;  %p4927_p11 = scmp.ne.s32.totalorder (!%p4926_p12), %s4910_s24, 0 }
  0xca   : > { %360 = sbr.rel (%p4926_p12) target bundleno = 1933 (0x78d), region = 52  ;;  %s2826_s5 = sshll.u32 (!%p4926_p12), %s4249_s6, 8 }
  0xcb   : > { %s363_s3 = scalar_lea.sflag (!%p4926_p12), [#allocation5], %s4249_s6  ;;  %s4253_s28 = scalar_lea.vmem (!%p4926_p12), [#allocation4], %s2826_s5 }
  0xd1   : > { %3865 = dma.done.wait (%p4927_p11), %s363_s3, 4096  }
  0xd2   : > { %3867 = vsyncadd (%p4927_p11), %s363_s3, 4294963200  ;;  %s371_s1 = sand.u32 1, %s4002_s0   ;;  %s2827_s26 = sshll.u32 %s4249_s6, 6 }
  0xd3   : > { %s372_s10 = scalar_lea.sflag [#allocation8], %s371_s1  ;;  %s4261_s19 = scalar_lea.vmem [#allocation7], %s2827_s26 }
  0xd4   : > { %3869 = dma.done.wait (%p4927_p11), %s372_s10, 1024  }
  0xd5   : > { %3871 = vsyncadd (%p4927_p11), %s372_s10, 4294966272  ;;  %p4928_p13 = scmp.eq.s32.totalorder %s4002_s0, 0 }
  0xd7   : > { %3873 = dma.done.wait (%p4928_p13), [#allocation8], 1024   ;;  %p4929_p10 = pmov %p4928_p13 }
  0xd9   : > { %3875 = vsyncadd (%p4929_p10), [#allocation8], 4294966272  ;;  %p4930_p0 = pmov %p4929_p10 }
  0xdb   : > { %3877 = dma.done.wait (%p4930_p0), [#allocation11], 3072   ;;  %p4931_p4 = pmov %p4930_p0 }
  0xdc   : > { %p4932_p5 = pmov %p4930_p0 }
  0xdd   : > { %3879 = vsyncadd (%p4931_p4), [#allocation11], 4294964224 }
  0xde   : > { %3881 = dma.done.wait (%p4932_p5), [#allocation14], 1024   ;;  %p4933_p1 = pmov %p4930_p0 }
  0xdf   : > { %v3484_v0 = vld [vmem:[#allocation9] sm:$0xff]   ;;  %v3485_v1 = vld [vmem:[#allocation9 + $0x8] sm:$0xff]   ;;  %v3486_v2 = vld [vmem:[#allocation9 + $0x10] sm:$0xff]   ;;  %s4634_s12 = sshll.u32 %s4002_s0, 2  ;;  %s2832_s16 = sshll.u32 %s4249_s6, 7 }
  0xe0   : > { %3883 = vsyncadd (%p4933_p1), [#allocation14], 4294966272  ;;  %3080 = vmatprep.subr.bf16.mxu0 %v3484_v0  ;;  %v3487_v3 = vld [vmem:[#allocation9 + $0x18] sm:$0xff]   ;;  %v3492_v4 = vld [vmem:[%s4253_s28] sm:$0xff]   ;;  %s1130_s23 = sld [smem:[#allocation3 + %s4634_s12]]  ;;  %s1131_s17 = sadd.s32 1, %s4634_s12 }
  0xe1   : > { %3081 = vmatpush3.bf16.msra.mxu0 %v3484_v0  ;;  %3096 = vmatprep.mubr.bf16.mxu0 %v3492_v4  ;;  %v3488_v5 = vld [vmem:[#allocation9 + $0x20] sm:$0xff]   ;;  %v3489_v6 = vld [vmem:[#allocation9 + $0x28] sm:$0xff]   ;;  %v3490_v7 = vld [vmem:[#allocation9 + $0x30] sm:$0xff]   ;;  %s1132_s11 = sld [smem:[#allocation3 + %s1131_s17]]  ;;  %s1133_s27 = sadd.s32 2, %s4634_s12 }
  0xe2   : > { %3082 = vmatprep.subr.bf16.mxu0 %v3485_v1  ;;  %v3491_v8 = vld [vmem:[#allocation9 + $0x38] sm:$0xff]   ;;  %v3512_v9 = vld [vmem:[#allocation10] sm:$0xff]   ;;  %v3493_v10 = vld [vmem:[%s4253_s28 + $0x8] sm:$0xff]   ;;  %s1134_s25 = sld [smem:[#allocation3 + %s1133_s27]]  ;;  %s1135_s30 = sadd.s32 3, %s4634_s12 }
  0xe3   : > { %v3494_v11 = vld [vmem:[%s4253_s28 + $0x10] sm:$0xff]   ;;  %3160 = vmatprep.subr.bf16.mxu1 %v3512_v9  ;;  %v3515_v12 = vld [vmem:[#allocation10 + $0x8] sm:$0xff]   ;;  %v3517_v14 = vld [vmem:[#allocation10 + $0x18] sm:$0xff]   ;;  %s1136_s29 = sld [smem:[#allocation3 + %s1135_s30]]  ;;  %s2927_s1 = sshll.u32 %s4002_s0, 11 }
  0xe4   : > { %3161 = vmatpush3.bf16.msra.mxu1 %v3512_v9  ;;  %v3516_v13 = vld [vmem:[#allocation10 + $0x10] sm:$0xff]   ;;  %v3495_v15 = vld [vmem:[%s4253_s28 + $0x18] sm:$0xff]   ;;  %v3496_v16 = vld [vmem:[%s4253_s28 + $0x20] sm:$0xff]   ;;  %s4838_s24 = scalar_lea.hbm %s4895_s9, %s2927_s1  ;;  %s2662_s0 = scalar_lea.sflag [#allocation6], %s4249_s6 }
  0xe5   : > { %3083 = vmatpush3.bf16.msra.mxu0 %v3485_v1  ;;  %3162 = vmatprep.subr.bf16.mxu1 %v3515_v12  ;;  %v3518_v17 = vld [vmem:[#allocation10 + $0x20] sm:$0xff]   ;;  %v3521_v19 = vld [vmem:[#allocation10 + $0x28] sm:$0xff]   ;;  %v3498_v21 = vld [vmem:[%s4253_s28 + $0x30] sm:$0xff]   ;;  %s3916_s12 = smov [#allocation15]  }
  0xe6   : > { %3084 = vmatprep.subr.bf16.mxu0 %v3486_v2  ;;  %v3524_v18 = vld [vmem:[%s4261_s19] sm:$0xff]   ;;  %v3497_v20 = vld [vmem:[%s4253_s28 + $0x28] sm:$0xff]   ;;  %v3522_v22 = vld [vmem:[#allocation10 + $0x30] sm:$0xff]  }
  0xe7   : > { %3176 = vmatprep.mubr.bf16.mxu1 %v3524_v18  ;;  %v3523_v23 = vld [vmem:[#allocation10 + $0x38] sm:$0xff]   ;;  %v3500_v25 = vld [vmem:[%s4253_s28 + $0x40] sm:$0xff]   ;;  %v3525_v27 = vld [vmem:[%s4261_s19 + $0x8] sm:$0xff]  }
  0xe8   : > { %3163 = vmatpush3.bf16.msra.mxu1 %v3515_v12  ;;  %v3499_v24 = vld [vmem:[%s4253_s28 + $0x38] sm:$0xff]   ;;  %v3530_v26 = vld [vmem:[#allocation12 + $0x4] ss:$8 sps:$4 sm:$0xff]   ;;  %v3528_v28 = vld [vmem:[#allocation12] ss:$8 sps:$4 sm:$0xff]  }
  0xe9   : > { %3085 = vmatpush3.bf16.msra.mxu0 %v3486_v2  ;;  %3164 = vmatprep.subr.bf16.mxu1 %v3516_v13  ;;  %v3531_v29 = vld [vmem:[%s4261_s19 + $0x10] sm:$0xff]   ;;  %v3501_v31 = vld [vmem:[%s4253_s28 + $0x48] sm:$0xff]   ;;  %v3535_v35 = vld [vmem:[%s4261_s19 + $0x18] sm:$0xff]   ;;  %v3915_v2 = vmov 0  }
  0xea   : > { %3086 = vmatprep.subr.bf16.mxu0 %v3487_v3  ;;  %v3534_v30 = vld [vmem:[#allocation12 + $0x14] ss:$8 sps:$4 sm:$0xff]   ;;  %v3532_v33 = vld [vmem:[#allocation12 + $0x10] ss:$8 sps:$4 sm:$0xff]   ;;  %v3538_v34 = vld [vmem:[#allocation12 + $0x24] ss:$8 sps:$4 sm:$0xff]  }
  0xeb   : > { %v3502_v32 = vld [vmem:[%s4253_s28 + $0x50] sm:$0xff]   ;;  %v3536_v36 = vld [vmem:[#allocation12 + $0x20] ss:$8 sps:$4 sm:$0xff]   ;;  %v3503_v39 = vld [vmem:[%s4253_s28 + $0x58] sm:$0xff]  }
  0xec   : > { %3165 = vmatpush3.bf16.msra.mxu1 %v3516_v13  ;;  %v3539_v37 = vld [vmem:[%s4261_s19 + $0x20] sm:$0xff]   ;;  %v3542_v38 = vld [vmem:[#allocation12 + $0x34] ss:$8 sps:$4 sm:$0xff]   ;;  %v3540_v41 = vld [vmem:[#allocation12 + $0x30] ss:$8 sps:$4 sm:$0xff]  }
  0xed   : > { %3087 = vmatpush3.bf16.msra.mxu0 %v3487_v3  ;;  %3166 = vmatprep.subr.bf16.mxu1 %v3517_v14  ;;  %v3504_v40 = vld [vmem:[%s4253_s28 + $0x60] sm:$0xff]   ;;  %v3543_v43 = vld [vmem:[%s4261_s19 + $0x28] sm:$0xff]   ;;  %v3549_v45 = vld [vmem:[%s4261_s19 + $0x30] sm:$0xff]  }
  0xee   : > { %3088 = vmatprep.subr.bf16.mxu0 %v3488_v5  ;;  %v3546_v42 = vld [vmem:[#allocation12 + $0x44] ss:$8 sps:$4 sm:$0xff]   ;;  %v3544_v44 = vld [vmem:[#allocation12 + $0x40] ss:$8 sps:$4 sm:$0xff]   ;;  %v3552_v46 = vld [vmem:[#allocation12 + $0x54] ss:$8 sps:$4 sm:$0xff]  }
  0xef   : > { %v3505_v47 = vld [vmem:[%s4253_s28 + $0x68] sm:$0xff]   ;;  %v3506_v48 = vld [vmem:[%s4253_s28 + $0x70] sm:$0xff]   ;;  %v3553_v50 = vld [vmem:[%s4261_s19 + $0x38] sm:$0xff]  }
  0xf0   : > { %3167 = vmatpush3.bf16.msra.mxu1 %v3517_v14  ;;  %v3550_v49 = vld [vmem:[#allocation12 + $0x50] ss:$8 sps:$4 sm:$0xff]   ;;  %v3508_v52 = vld [vmem:[%s4253_s28 + $0x80] sm:$0xff]   ;;  %v3509_v53 = vld [vmem:[%s4253_s28 + $0x88] sm:$0xff]  }
  0xf1   : > { %3089 = vmatpush3.bf16.msra.mxu0 %v3488_v5  ;;  %3168 = vmatprep.subr.bf16.mxu1 %v3518_v17  ;;  %v3507_v51 = vld [vmem:[%s4253_s28 + $0x78] sm:$0xff]   ;;  %v3510_v54 = vld [vmem:[%s4253_s28 + $0x90] sm:$0xff]   ;;  %v3513_v56 = vld [vmem:[%s4253_s28 + $0xa0] sm:$0xff]  }
  0xf2   : > { %3090 = vmatprep.subr.bf16.mxu0 %v3489_v6  ;;  %v3511_v55 = vld [vmem:[%s4253_s28 + $0x98] sm:$0xff]   ;;  %v3514_v57 = vld [vmem:[%s4253_s28 + $0xa8] sm:$0xff]   ;;  %v3519_v58 = vld [vmem:[%s4253_s28 + $0xb0] sm:$0xff]  }
  0xf3   : > { %v3556_v59 = vld [vmem:[#allocation12 + $0x64] ss:$8 sps:$4 sm:$0xff]   ;;  %v3520_v60 = vld [vmem:[%s4253_s28 + $0xb8] sm:$0xff]   ;;  %v3554_v61 = vld [vmem:[#allocation12 + $0x60] ss:$8 sps:$4 sm:$0xff]  }
  0xf4   : > { %3169 = vmatpush3.bf16.msra.mxu1 %v3518_v17  ;;  %v3526_v62 = vld [vmem:[%s4253_s28 + $0xc0] sm:$0xff]   ;;  %v3559_v63 = vld [vmem:[#allocation12 + $0x74] ss:$8 sps:$4 sm:$0xff]   ;;  %v3557_v0 = vld [vmem:[#allocation12 + $0x70] ss:$8 sps:$4 sm:$0xff]  }
  0xf5   : > { %3091 = vmatpush3.bf16.msra.mxu0 %v3489_v6  ;;  %3170 = vmatprep.subr.bf16.mxu1 %v3521_v19  ;;  %v3527_v1 = vld [vmem:[%s4253_s28 + $0xc8] sm:$0xff]   ;;  %v3547_v3 = vld [vmem:[%s4253_s28 + $0xd0] sm:$0xff]   ;;  %v3548_v4 = vld [vmem:[%s4253_s28 + $0xd8] sm:$0xff]  }
  0xf6   : > { %3092 = vmatprep.subr.bf16.mxu0 %v3490_v7  ;;  %v3560_v5 = vld [vmem:[%s4253_s28 + $0xe0] sm:$0xff]   ;;  %v3561_v6 = vld [vmem:[%s4253_s28 + $0xe8] sm:$0xff]  }
  0xf7   : > { %v4323_v9 = vld [vmem:[%s4890_s4] ss:$0 sm:$0xff] }
  0xf8   : > { %3171 = vmatpush3.bf16.msra.mxu1 %v3521_v19 }
  0xf9   : > { %3093 = vmatpush3.bf16.msra.mxu0 %v3490_v7  ;;  %3172 = vmatprep.subr.bf16.mxu1 %v3522_v22  ;;  %v3562_v7 = vld [vmem:[%s4253_s28 + $0xf0] sm:$0xff]  }
  0xfa   : > { %3094 = vmatprep.subr.bf16.mxu0 %v3491_v8 }
  0xfc   : > { %3173 = vmatpush3.bf16.msra.mxu1 %v3522_v22 }
  0xfd   : > { %3095 = vmatpush3.bf16.msra.mxu0 %v3491_v8  ;;  %3174 = vmatprep.subr.bf16.mxu1 %v3523_v23  ;;  %v3563_v8 = vld [vmem:[%s4253_s28 + $0xf8] sm:$0xff]   ;;  %s4818_s28 = scalar_lea.vmem [#allocation15], %s2832_s16 }
  0xfe   : > { %s2676_s26 = sshll.u32 %s4818_s28, 4  ;;  %s4840_s26 = int_to_ptr.vmem [resolvable:$true] %s2676_s26 }
  0xff   : > { %s3818_s13 = scalar_lea.vmem %s4840_s26, 2048 }
 0x100   : > { %3097 = vmatmul.mubr.bf16.vlgmr.msra.gmra.mrb[0].mxu0 %v3493_v10  ;;  %3175 = vmatpush3.bf16.msra.mxu1 %v3523_v23  ;;  %p3819_p2 = scmp.ne.s32.totalorder %s4840_s26, %s3818_s13 }
 0x101   : > { %3100 = vmatprep.mubr.bf16.mxu0 %v3494_v11  ;;  %1491 = vmatprep.subr.bf16.mxu1 %v3530_v26 }
 0x102   : > { %p3820_p7 = pnand %p3819_p2, %p4148_p3 }
 0x103   : > { %3177 = vmatmul.mubr.bf16.vlgmr.msra.gmra.mrb[0].mxu1 %v3525_v27 }
 0x104   : > { %1492 = vmatpush1.bf16.msra.mxu1 %v3528_v28  ;;  %3180 = vmatprep.mubr.bf16.mxu1 %v3531_v29  ;;  %p3821_p9 = pneg %p3820_p7 }
 0x105   : > { %1493 = vmatprep.subr.bf16.mxu1 %v3534_v30 }
 0x108   : > { %3101 = vmatmul.mubr.bf16.gmra.mrb[4].mxu0 %v3495_v15  ;;  %1494 = vmatpush1.bf16.msra.mxu1 %v3532_v33 }
 0x109   : > { %3104 = vmatprep.mubr.bf16.mxu0 %v3496_v16  ;;  %1495 = vmatprep.subr.bf16.mxu1 %v3538_v34 }
 0x10b   : > { %3181 = vmatmul.mubr.bf16.gmra.mrb[4].mxu1 %v3535_v35 }
 0x10c   : > { %1496 = vmatpush1.bf16.msra.mxu1 %v3536_v36  ;;  %3184 = vmatprep.mubr.bf16.mxu1 %v3539_v37 }
 0x10d   : > { %1497 = vmatprep.subr.bf16.mxu1 %v3542_v38 }
 0x110   : > { %3105 = vmatmul.mubr.bf16.gmra.mrb[8].mxu0 %v3497_v20  ;;  %1498 = vmatpush1.bf16.msra.mxu1 %v3540_v41 }
 0x111   : > { %3108 = vmatprep.mubr.bf16.mxu0 %v3498_v21  ;;  %1499 = vmatprep.subr.bf16.mxu1 %v3546_v42 }
 0x113   : > { %3185 = vmatmul.mubr.bf16.gmra.mrb[8].mxu1 %v3543_v43 }
 0x114   : > { %1500 = vmatpush1.bf16.msra.mxu1 %v3544_v44  ;;  %3188 = vmatprep.mubr.bf16.mxu1 %v3549_v45 }
 0x115   : > { %1501 = vmatprep.subr.bf16.mxu1 %v3552_v46 }
 0x118   : > { %3109 = vmatmul.mubr.bf16.gmra.mrb[12].mxu0 %v3499_v24  ;;  %1502 = vmatpush1.bf16.msra.mxu1 %v3550_v49 }
 0x119   : > { %3112 = vmatprep.mubr.bf16.mxu0 %v3500_v25  ;;  %1503 = vmatprep.subr.bf16.mxu1 %v3556_v59 }
 0x11b   : > { %3189 = vmatmul.mubr.bf16.gmra.mrb[12].mxu1 %v3553_v50 }
 0x11c   : > { %1504 = vmatpush1.bf16.msra.mxu1 %v3554_v61  ;;  %1523 = vmatprep.mubr.bf16.mxu1 %v3915_v2 }
 0x11d   : > { %1505 = vmatprep.subr.bf16.mxu1 %v3559_v63 }
 0x120   : > { %3113 = vmatmul.mubr.bf16.gmra.mrb[16].mxu0 %v3501_v31  ;;  %1506 = vmatpush1.bf16.msra.mxu1 %v3557_v0 }
 0x121   : > { %3116 = vmatprep.mubr.bf16.mxu0 %v3502_v32 }
 0x128   : > { %3117 = vmatmul.mubr.bf16.gmra.mrb[20].mxu0 %v3503_v39 }
 0x129   : > { %3120 = vmatprep.mubr.bf16.mxu0 %v3504_v40 }
 0x130   : > { %3121 = vmatmul.mubr.bf16.gmra.mrb[24].mxu0 %v3505_v47 }
 0x131   : > { %3124 = vmatprep.mubr.bf16.mxu0 %v3506_v48 }
 0x138   : > { %3125 = vmatmul.mubr.bf16.gmra.mrb[28].mxu0 %v3507_v51 }
 0x139   : > { %3128 = vmatprep.mubr.bf16.mxu0 %v3508_v52 }
 0x140   : > { %3129 = vmatmul.mubr.bf16.gmra.mrb[32].mxu0 %v3509_v53 }
 0x141   : > { %3132 = vmatprep.mubr.bf16.mxu0 %v3510_v54 }
 0x148   : > { %3133 = vmatmul.mubr.bf16.gmra.mrb[36].mxu0 %v3511_v55 }
 0x149   : > { %3136 = vmatprep.mubr.bf16.mxu0 %v3513_v56 }
 0x150   : > { %3137 = vmatmul.mubr.bf16.gmra.mrb[40].mxu0 %v3514_v57 }
 0x151   : > { %3140 = vmatprep.mubr.bf16.mxu0 %v3519_v58 }
 0x158   : > { %3141 = vmatmul.mubr.bf16.gmra.mrb[44].mxu0 %v3520_v60 }
 0x159   : > { %3144 = vmatprep.mubr.bf16.mxu0 %v3526_v62 }
 0x160   : > { %3145 = vmatmul.mubr.bf16.gmra.mrb[48].mxu0 %v3527_v1 }
 0x161   : > { %3148 = vmatprep.mubr.bf16.mxu0 %v3547_v3 }
 0x168   : > { %3149 = vmatmul.mubr.bf16.gmra.mrb[52].mxu0 %v3548_v4 }
 0x169   : > { %3152 = vmatprep.mubr.bf16.mxu0 %v3560_v5 }
 0x170   : > { %3153 = vmatmul.mubr.bf16.gmra.mrb[56].mxu0 %v3561_v6 }
 0x171   : > { %3156 = vmatprep.mubr.bf16.mxu0 %v3562_v7 }
 0x178   : > { %3157 = vmatmul.mubr.bf16.gmra.mrb[60].mxu0 %v3563_v8 }
 0x1d3   : > { %v3098_v10 = vpop.f32.mrb[0].mxu0 }
 0x1d4   : > { %v804_v11 = vadd.f32 %v3098_v10, %v4323_v9  ;;  %v795_v12 = vpop.f32.mrb[1].mxu0 }
 0x1d5   : > { %v796_v13 = vadd.f32 %v4323_v9, %v795_v12  ;;  %v3099_v14 = vpop.f32.mrb[2].mxu0 }
 0x1d6   : > { %v807_v15 = vadd.f32 %v3099_v14, %v4323_v9  ;;  %v798_v16 = vpop.f32.mrb[3].mxu0  ;;  %v1052_v18 = vmax.f32 %v804_v11, 0.0 }
 0x1d7   : > { %v799_v17 = vadd.f32 %v4323_v9, %v798_v16  ;;  %v1050_v20 = vmax.f32 %v796_v13, 0.0 }
 0x1d8   : > { %v1053_v19 = vmax.f32 %v807_v15, 0.0 }
 0x1d9   : > { %v1051_v21 = vmax.f32 %v799_v17, 0.0 }
 0x1da   : > { %v1138_v22 = vpack.c.bf16 %v1053_v19, %v1052_v18 }
 0x1db   : > { %v1137_v23 = vpack.c.bf16 %v1051_v21, %v1050_v20  ;;  %v3102_v24 = vpop.f32.mrb[4].mxu0 }
 0x1dc   : > { %v820_v25 = vadd.f32 %v3102_v24, %v4323_v9  ;;  %v811_v26 = vpop.f32.mrb[5].mxu0 }
 0x1dd   : > { %1524 = vmatmul.mubr.bf16.vlgmr.msra.gmra.mrb[16].mxu1 %v1137_v23  ;;  %v812_v27 = vadd.f32 %v4323_v9, %v811_v26  ;;  %v3103_v28 = vpop.f32.mrb[6].mxu0 }
 0x1de   : > { %v1056_v29 = vmax.f32 %v820_v25, 0.0  ;;  %v823_v30 = vadd.f32 %v3103_v28, %v4323_v9  ;;  %v814_v31 = vpop.f32.mrb[7].mxu0  ;;  %1533 = vmatprep.mubr.bf16.mxu1 %v3915_v2 }
 0x1df   : > { %v1054_v32 = vmax.f32 %v812_v27, 0.0  ;;  %v815_v33 = vadd.f32 %v4323_v9, %v814_v31 }
 0x1e0   : > { %v1057_v34 = vmax.f32 %v823_v30, 0.0 }
 0x1e1   : > { %v1055_v35 = vmax.f32 %v815_v33, 0.0 }
 0x1e2   : > { %v1140_v36 = vpack.c.bf16 %v1057_v34, %v1056_v29 }
 0x1e3   : > { %v1139_v37 = vpack.c.bf16 %v1055_v35, %v1054_v32  ;;  %v3106_v38 = vpop.f32.mrb[8].mxu0 }
 0x1e4   : > { %v836_v39 = vadd.f32 %v3106_v38, %v4323_v9  ;;  %v827_v40 = vpop.f32.mrb[9].mxu0 }
 0x1e5   : > { %1534 = vmatmul.mubr.bf16.gmra.mrb[20].mxu1 %v1138_v22  ;;  %v828_v41 = vadd.f32 %v4323_v9, %v827_v40  ;;  %v3107_v42 = vpop.f32.mrb[10].mxu0  ;;  %v4368_v40 = vpop.f32.mrb[0].mxu1 }
 0x1e6   : > { %1543 = vmatprep.mubr.bf16.mxu1 %v3915_v2  ;;  %v1060_v43 = vmax.f32 %v836_v39, 0.0  ;;  %v839_v44 = vadd.f32 %v3107_v42, %v4323_v9  ;;  %v830_v45 = vpop.f32.mrb[11].mxu0 }
 0x1e7   : > { %v1058_v46 = vmax.f32 %v828_v41, 0.0  ;;  %v831_v47 = vadd.f32 %v4323_v9, %v830_v45 }
 0x1e8   : > { %v1061_v48 = vmax.f32 %v839_v44, 0.0 }
 0x1e9   : > { %v1059_v49 = vmax.f32 %v831_v47, 0.0 }
 0x1ea   : > { %v1142_v50 = vpack.c.bf16 %v1061_v48, %v1060_v43 }
 0x1eb   : > { %v1141_v51 = vpack.c.bf16 %v1059_v49, %v1058_v46  ;;  %v3110_v52 = vpop.f32.mrb[12].mxu0 }
 0x1ec   : > { %v852_v53 = vadd.f32 %v3110_v52, %v4323_v9  ;;  %v843_v54 = vpop.f32.mrb[13].mxu0  ;;  %v1348_v52 = vpop.f32.mrb[1].mxu1 }
 0x1ed   : > { %1544 = vmatmul.mubr.bf16.gmra.mrb[24].mxu1 %v1139_v37  ;;  %v844_v55 = vadd.f32 %v4323_v9, %v843_v54  ;;  %v3111_v56 = vpop.f32.mrb[14].mxu0 }
 0x1ee   : > { %1553 = vmatprep.mubr.bf16.mxu1 %v3915_v2  ;;  %v1064_v57 = vmax.f32 %v852_v53, 0.0  ;;  %v855_v58 = vadd.f32 %v3111_v56, %v4323_v9  ;;  %v846_v59 = vpop.f32.mrb[15].mxu0  ;;  %v4379_v56 = vpop.f32.mrb[2].mxu1 }
 0x1ef   : > { %v1062_v60 = vmax.f32 %v844_v55, 0.0  ;;  %v847_v61 = vadd.f32 %v4323_v9, %v846_v59  ;;  %v1845_v59 = vpack.c.bf16 %v4379_v56, %v4368_v40 }
 0x1f0   : > { %v1065_v62 = vmax.f32 %v855_v58, 0.0 }
 0x1f1   : > { %v1063_v63 = vmax.f32 %v847_v61, 0.0 }
 0x1f2   : > { %v4344_v0 = vpack.c.bf16 %v1065_v62, %v1064_v57 }
 0x1f3   : > { %v1143_v1 = vpack.c.bf16 %v1063_v63, %v1062_v60  ;;  %v3114_v3 = vpop.f32.mrb[16].mxu0  ;;  %v1351_v60 = vpop.f32.mrb[3].mxu1 }
 0x1f4   : > { %v868_v4 = vadd.f32 %v3114_v3, %v4323_v9  ;;  %v859_v5 = vpop.f32.mrb[17].mxu0  ;;  %v1844_v62 = vpack.c.bf16 %v1351_v60, %v1348_v52  ;;  %v4384_v63 = vpop.f32.mrb[4].mxu1 }
 0x1f5   : > { %1554 = vmatmul.mubr.bf16.gmra.mrb[28].mxu1 %v1140_v36  ;;  %v860_v6 = vadd.f32 %v4323_v9, %v859_v5  ;;  %v3115_v7 = vpop.f32.mrb[18].mxu0 }
 0x1f6   : > { %1563 = vmatprep.mubr.bf16.mxu1 %v3915_v2  ;;  %v1068_v8 = vmax.f32 %v868_v4, 0.0  ;;  %v871_v10 = vadd.f32 %v3115_v7, %v4323_v9  ;;  %v862_v11 = vpop.f32.mrb[19].mxu0  ;;  %3208 = vmatprep.mubr.bf16.mxu0 %v1844_v62 }
 0x1f7   : > { %v1066_v12 = vmax.f32 %v860_v6, 0.0  ;;  %v863_v13 = vadd.f32 %v4323_v9, %v862_v11  ;;  %v4393_v11 = vpop.f32.mrb[5].mxu1 }
 0x1f8   : > { %v1069_v14 = vmax.f32 %v871_v10, 0.0 }
 0x1f9   : > { %v1067_v15 = vmax.f32 %v863_v13, 0.0 }
 0x1fa   : > { %v4351_v16 = vpack.c.bf16 %v1069_v14, %v1068_v8 }
 0x1fb   : > { %v4353_v17 = vpack.c.bf16 %v1067_v15, %v1066_v12  ;;  %v3118_v18 = vpop.f32.mrb[20].mxu0  ;;  %v4397_v15 = vpop.f32.mrb[6].mxu1 }
 0x1fc   : > { %v884_v19 = vadd.f32 %v3118_v18, %v4323_v9  ;;  %v875_v20 = vpop.f32.mrb[21].mxu0 }
 0x1fd   : > { %1564 = vmatmul.mubr.bf16.gmra.mrb[32].mxu1 %v1141_v51  ;;  %v876_v21 = vadd.f32 %v4323_v9, %v875_v20  ;;  %v3119_v22 = vpop.f32.mrb[22].mxu0  ;;  %v1847_v20 = vpack.c.bf16 %v4397_v15, %v4384_v63 }
 0x1fe   : > { %1573 = vmatprep.mubr.bf16.mxu1 %v3915_v2  ;;  %v1072_v23 = vmax.f32 %v884_v19, 0.0  ;;  %v887_v24 = vadd.f32 %v3119_v22, %v4323_v9  ;;  %v878_v25 = vpop.f32.mrb[23].mxu0 }
 0x1ff   : > { %v1070_v26 = vmax.f32 %v876_v21, 0.0  ;;  %v879_v27 = vadd.f32 %v4323_v9, %v878_v25 }
 0x200   : > { %v1073_v28 = vmax.f32 %v887_v24, 0.0 }
 0x201   : > { %v1071_v29 = vmax.f32 %v879_v27, 0.0 }
 0x202   : > { %v4360_v30 = vpack.c.bf16 %v1073_v28, %v1072_v23 }
 0x203   : > { %v4362_v31 = vpack.c.bf16 %v1071_v29, %v1070_v26  ;;  %v3122_v32 = vpop.f32.mrb[24].mxu0 }
 0x204   : > { %v900_v33 = vadd.f32 %v3122_v32, %v4323_v9  ;;  %v891_v34 = vpop.f32.mrb[25].mxu0 }
 0x205   : > { %1574 = vmatmul.mubr.bf16.gmra.mrb[36].mxu1 %v1142_v50  ;;  %v892_v35 = vadd.f32 %v4323_v9, %v891_v34  ;;  %v3123_v36 = vpop.f32.mrb[26].mxu0 }
 0x206   : > { %1583 = vmatprep.mubr.bf16.mxu1 %v3915_v2  ;;  %v1076_v37 = vmax.f32 %v900_v33, 0.0  ;;  %v903_v38 = vadd.f32 %v3123_v36, %v4323_v9  ;;  %v894_v39 = vpop.f32.mrb[27].mxu0 }
 0x207   : > { %v1074_v41 = vmax.f32 %v892_v35, 0.0  ;;  %v895_v42 = vadd.f32 %v4323_v9, %v894_v39 }
 0x208   : > { %v1077_v43 = vmax.f32 %v903_v38, 0.0 }
 0x209   : > { %v1075_v44 = vmax.f32 %v895_v42, 0.0 }
 0x20a   : > { %v4371_v45 = vpack.c.bf16 %v1077_v43, %v1076_v37 }
 0x20b   : > { %v4373_v46 = vpack.c.bf16 %v1075_v44, %v1074_v41  ;;  %v3126_v47 = vpop.f32.mrb[28].mxu0 }
 0x20c   : > { %v916_v48 = vadd.f32 %v3126_v47, %v4323_v9  ;;  %v907_v49 = vpop.f32.mrb[29].mxu0 }
 0x20d   : > { %1584 = vmatmul.mubr.bf16.gmra.mrb[40].mxu1 %v1143_v1  ;;  %v908_v50 = vadd.f32 %v4323_v9, %v907_v49  ;;  %v3127_v51 = vpop.f32.mrb[30].mxu0 }
 0x20e   : > { %1593 = vmatprep.mubr.bf16.mxu1 %v3915_v2  ;;  %v1080_v53 = vmax.f32 %v916_v48, 0.0  ;;  %v919_v54 = vadd.f32 %v3127_v51, %v4323_v9  ;;  %v910_v55 = vpop.f32.mrb[31].mxu0 }
 0x20f   : > { %v1078_v57 = vmax.f32 %v908_v50, 0.0  ;;  %v911_v58 = vadd.f32 %v4323_v9, %v910_v55 }
 0x210   : > { %v1081_v61 = vmax.f32 %v919_v54, 0.0 }
 0x211   : > { %v1079_v1 = vmax.f32 %v911_v58, 0.0 }
 0x212   : > { %v4386_v3 = vpack.c.bf16 %v1081_v61, %v1080_v53 }
 0x213   : > { %v4388_v4 = vpack.c.bf16 %v1079_v1, %v1078_v57  ;;  %v3130_v5 = vpop.f32.mrb[32].mxu0 }
 0x214   : > { %v932_v6 = vadd.f32 %v3130_v5, %v4323_v9  ;;  %v923_v7 = vpop.f32.mrb[33].mxu0 }
 0x215   : > { %1594 = vmatmul.mubr.bf16.gmra.mrb[44].mxu1 %v4344_v0  ;;  %v924_v8 = vadd.f32 %v4323_v9, %v923_v7  ;;  %v3131_v10 = vpop.f32.mrb[34].mxu0  ;;  %v4402_v0 = vpop.f32.mrb[7].mxu1 }
 0x216   : > { %1603 = vmatprep.mubr.bf16.mxu1 %v3915_v2  ;;  %v1084_v12 = vmax.f32 %v932_v6, 0.0  ;;  %v935_v13 = vadd.f32 %v3131_v10, %v4323_v9  ;;  %v926_v14 = vpop.f32.mrb[35].mxu0  ;;  %v1846_v22 = vpack.c.bf16 %v4402_v0, %v4393_v11  ;;  %v4406_v23 = vpop.f32.mrb[8].mxu1 }
 0x217   : > { %v1082_v18 = vmax.f32 %v924_v8, 0.0  ;;  %v927_v19 = vadd.f32 %v4323_v9, %v926_v14  ;;  %v4415_v34 = vpop.f32.mrb[9].mxu1 }
 0x218   : > { %v1085_v21 = vmax.f32 %v935_v13, 0.0  ;;  %v4419_v38 = vpop.f32.mrb[10].mxu1 }
 0x219   : > { %v1083_v24 = vmax.f32 %v927_v19, 0.0  ;;  %v1849_v42 = vpack.c.bf16 %v4419_v38, %v4406_v23 }
 0x21a   : > { %v4408_v25 = vpack.c.bf16 %v1085_v21, %v1084_v12 }
 0x21b   : > { %v4410_v26 = vpack.c.bf16 %v1083_v24, %v1082_v18  ;;  %v3134_v27 = vpop.f32.mrb[36].mxu0 }
 0x21c   : > { %v948_v28 = vadd.f32 %v3134_v27, %v4323_v9  ;;  %v939_v29 = vpop.f32.mrb[37].mxu0 }
 0x21d   : > { %1604 = vmatmul.mubr.bf16.gmra.mrb[48].mxu1 %v4353_v17  ;;  %v940_v32 = vadd.f32 %v4323_v9, %v939_v29  ;;  %v3135_v33 = vpop.f32.mrb[38].mxu0  ;;  %v4424_v17 = vpop.f32.mrb[11].mxu1 }
 0x21e   : > { %1613 = vmatprep.mubr.bf16.mxu1 %v3915_v2  ;;  %v1088_v35 = vmax.f32 %v948_v28, 0.0  ;;  %v951_v36 = vadd.f32 %v3135_v33, %v4323_v9  ;;  %v942_v37 = vpop.f32.mrb[39].mxu0  ;;  %v1848_v44 = vpack.c.bf16 %v4424_v17, %v4415_v34  ;;  %v4428_v47 = vpop.f32.mrb[12].mxu1 }
 0x21f   : > { %v1086_v39 = vmax.f32 %v940_v32, 0.0  ;;  %v943_v41 = vadd.f32 %v4323_v9, %v942_v37  ;;  %v4437_v57 = vpop.f32.mrb[13].mxu1 }
 0x220   : > { %v1089_v43 = vmax.f32 %v951_v36, 0.0  ;;  %v4441_v62 = vpop.f32.mrb[14].mxu1 }
 0x221   : > { %v1087_v48 = vmax.f32 %v943_v41, 0.0  ;;  %v1851_v6 = vpack.c.bf16 %v4441_v62, %v4428_v47  ;;  %v2114_v62 = vstv %s1130_s23  ;;  %s3822_s23 = sshll.u32 %s3916_s12, 4  ;;  %s3823_s23 = int_to_ptr.vmem [resolvable:$false] %s3822_s23 }
 0x222   : > { %v4430_v49 = vpack.c.bf16 %v1089_v43, %v1088_v35  ;;  %s3824_s17 = scalar_lea.vmem %s3823_s23, 4096  ;;  %p3825_p6 = scmp.lt.s32.totalorder %s4840_s26, %s3823_s23 }
 0x223   : > { %v4432_v50 = vpack.c.bf16 %v1087_v48, %v1086_v39  ;;  %v3138_v51 = vpop.f32.mrb[40].mxu0  ;;  %p3826_p8 = scmp.lt.s32.totalorder %s3824_s17, %s3818_s13 }
 0x224   : > { %v964_v52 = vadd.f32 %v3138_v51, %v4323_v9  ;;  %v955_v53 = vpop.f32.mrb[41].mxu0 }
 0x225   : > { %1614 = vmatmul.mubr.bf16.gmra.mrb[52].mxu1 %v4351_v16  ;;  %v956_v54 = vadd.f32 %v4323_v9, %v955_v53  ;;  %v3139_v55 = vpop.f32.mrb[42].mxu0  ;;  %v4446_v16 = vpop.f32.mrb[15].mxu1  ;;  %p3827_p12 = por %p3826_p8, %p3825_p6 }
 0x226   : > { %1623 = vmatprep.mubr.bf16.mxu1 %v3915_v2  ;;  %v1092_v58 = vmax.f32 %v964_v52, 0.0  ;;  %v967_v60 = vadd.f32 %v3139_v55, %v4323_v9  ;;  %v958_v61 = vpop.f32.mrb[43].mxu0  ;;  %v1850_v8 = vpack.c.bf16 %v4446_v16, %v4437_v57 }
 0x227   : > { %v1090_v1 = vmax.f32 %v956_v54, 0.0  ;;  %v959_v5 = vadd.f32 %v4323_v9, %v958_v61  ;;  %p3828_p11 = pnand %p3827_p12, %p3821_p9 }
 0x228   : > { %v1093_v7 = vmax.f32 %v967_v60, 0.0 }
 0x229   : > { %v1091_v10 = vmax.f32 %v959_v5, 0.0 }
 0x22a   : > { %v4450_v12 = vpack.c.bf16 %v1093_v7, %v1092_v58 }
 0x22b   : > { %v4452_v13 = vpack.c.bf16 %v1091_v10, %v1090_v1  ;;  %v3142_v14 = vpop.f32.mrb[44].mxu0 }
 0x22c   : > { %v980_v18 = vadd.f32 %v3142_v14, %v4323_v9  ;;  %v971_v19 = vpop.f32.mrb[45].mxu0 }
 0x22d   : > { %1624 = vmatmul.mubr.bf16.gmra.mrb[56].mxu1 %v4362_v31  ;;  %v972_v21 = vadd.f32 %v4323_v9, %v971_v19  ;;  %v3143_v24 = vpop.f32.mrb[46].mxu0 }
 0x22e   : > { %1633 = vmatprep.mubr.bf16.mxu1 %v3915_v2  ;;  %v1096_v27 = vmax.f32 %v980_v18, 0.0  ;;  %v983_v28 = vadd.f32 %v3143_v24, %v4323_v9  ;;  %v974_v29 = vpop.f32.mrb[47].mxu0 }
 0x22f   : > { %v1094_v32 = vmax.f32 %v972_v21, 0.0  ;;  %v975_v33 = vadd.f32 %v4323_v9, %v974_v29 }
 0x230   : > { %v1097_v35 = vmax.f32 %v983_v28, 0.0 }
 0x231   : > { %v1095_v36 = vmax.f32 %v975_v33, 0.0 }
 0x232   : > { %v4460_v37 = vpack.c.bf16 %v1097_v35, %v1096_v27 }
 0x233   : > { %v4462_v39 = vpack.c.bf16 %v1095_v36, %v1094_v32  ;;  %v3146_v41 = vpop.f32.mrb[48].mxu0 }
 0x234   : > { %v996_v31 = vadd.f32 %v3146_v41, %v4323_v9  ;;  %v987_v43 = vpop.f32.mrb[49].mxu0 }
 0x235   : > { %1634 = vmatmul.mubr.bf16.gmra.mrb[60].mxu1 %v4360_v30  ;;  %v988_v48 = vadd.f32 %v4323_v9, %v987_v43  ;;  %v3147_v51 = vpop.f32.mrb[50].mxu0 }
 0x236   : > { %1643 = vmatprep.mubr.bf16.mxu1 %v3915_v2  ;;  %v1100_v52 = vmax.f32 %v996_v31, 0.0  ;;  %v999_v53 = vadd.f32 %v3147_v51, %v4323_v9  ;;  %v990_v54 = vpop.f32.mrb[51].mxu0 }
 0x237   : > { %v1098_v55 = vmax.f32 %v988_v48, 0.0  ;;  %v991_v58 = vadd.f32 %v4323_v9, %v990_v54 }
 0x238   : > { %v1101_v60 = vmax.f32 %v999_v53, 0.0 }
 0x239   : > { %v1099_v61 = vmax.f32 %v991_v58, 0.0 }
 0x23a   : > { %v4470_v1 = vpack.c.bf16 %v1101_v60, %v1100_v52 }
 0x23b   : > { %v4472_v5 = vpack.c.bf16 %v1099_v61, %v1098_v55  ;;  %v3150_v7 = vpop.f32.mrb[52].mxu0 }
 0x23c   : > { %v1012_v30 = vadd.f32 %v3150_v7, %v4323_v9  ;;  %v1003_v10 = vpop.f32.mrb[53].mxu0 }
 0x23d   : > { %1644 = vmatmul.mubr.bf16.gmra.mrb[64].mxu1 %v4373_v46  ;;  %v1004_v14 = vadd.f32 %v4323_v9, %v1003_v10  ;;  %v3151_v18 = vpop.f32.mrb[54].mxu0 }
 0x23e   : > { %1653 = vmatprep.mubr.bf16.mxu1 %v3915_v2  ;;  %v1104_v19 = vmax.f32 %v1012_v30, 0.0  ;;  %v1015_v21 = vadd.f32 %v3151_v18, %v4323_v9  ;;  %v1006_v24 = vpop.f32.mrb[55].mxu0 }
 0x23f   : > { %v1102_v27 = vmax.f32 %v1004_v14, 0.0  ;;  %v1007_v28 = vadd.f32 %v4323_v9, %v1006_v24 }
 0x240   : > { %v1105_v29 = vmax.f32 %v1015_v21, 0.0 }
 0x241   : > { %v1103_v32 = vmax.f32 %v1007_v28, 0.0 }
 0x242   : > { %v4480_v33 = vpack.c.bf16 %v1105_v29, %v1104_v19 }
 0x243   : > { %v1163_v35 = vpack.c.bf16 %v1103_v32, %v1102_v27  ;;  %v3154_v36 = vpop.f32.mrb[56].mxu0 }
 0x244   : > { %v1028_v46 = vadd.f32 %v3154_v36, %v4323_v9  ;;  %v1019_v41 = vpop.f32.mrb[57].mxu0 }
 0x245   : > { %1654 = vmatmul.mubr.bf16.gmra.mrb[68].mxu1 %v4371_v45  ;;  %v1020_v31 = vadd.f32 %v4323_v9, %v1019_v41  ;;  %v3155_v43 = vpop.f32.mrb[58].mxu0 }
 0x246   : > { %1663 = vmatprep.mubr.bf16.mxu1 %v3915_v2  ;;  %v1108_v48 = vmax.f32 %v1028_v46, 0.0  ;;  %v1031_v51 = vadd.f32 %v3155_v43, %v4323_v9  ;;  %v1022_v52 = vpop.f32.mrb[59].mxu0 }
 0x247   : > { %v1106_v53 = vmax.f32 %v1020_v31, 0.0  ;;  %v1023_v54 = vadd.f32 %v4323_v9, %v1022_v52 }
 0x248   : > { %v1109_v55 = vmax.f32 %v1031_v51, 0.0 }
 0x249   : > { %v1107_v58 = vmax.f32 %v1023_v54, 0.0 }
 0x24a   : > { %v4488_v60 = vpack.c.bf16 %v1109_v55, %v1108_v48 }
 0x24b   : > { %v1165_v61 = vpack.c.bf16 %v1107_v58, %v1106_v53  ;;  %v3158_v7 = vpop.f32.mrb[60].mxu0 }
 0x24c   : > { %v1044_v45 = vadd.f32 %v3158_v7, %v4323_v9  ;;  %v1035_v30 = vpop.f32.mrb[61].mxu0 }
 0x24d   : > { %1664 = vmatmul.mubr.bf16.gmra.mrb[72].mxu1 %v4388_v4  ;;  %v1036_v10 = vadd.f32 %v4323_v9, %v1035_v30  ;;  %v3159_v14 = vpop.f32.mrb[62].mxu0 }
 0x24e   : > { %1673 = vmatprep.mubr.bf16.mxu1 %v3915_v2  ;;  %v1112_v18 = vmax.f32 %v1044_v45, 0.0  ;;  %v1047_v19 = vadd.f32 %v3159_v14, %v4323_v9  ;;  %v1038_v21 = vpop.f32.mrb[63].mxu0 }
 0x24f   : > { %v1110_v24 = vmax.f32 %v1036_v10, 0.0  ;;  %v1039_v27 = vadd.f32 %v4323_v9, %v1038_v21 }
 0x250   : > { %v1113_v28 = vmax.f32 %v1047_v19, 0.0 }
 0x251   : > { %v1111_v29 = vmax.f32 %v1039_v27, 0.0 }
 0x252   : > { %v4496_v32 = vpack.c.bf16 %v1113_v28, %v1112_v18 }
 0x253   : > { %v1167_v36 = vpack.c.bf16 %v1111_v29, %v1110_v24 }
 0x255   : > { %1674 = vmatmul.mubr.bf16.gmra.mrb[76].mxu1 %v4386_v3 }
 0x256   : > { %1683 = vmatprep.mubr.bf16.mxu1 %v3915_v2 }
 0x25d   : > { %1684 = vmatmul.mubr.bf16.gmra.mrb[80].mxu1 %v4410_v26 }
 0x25e   : > { %1693 = vmatprep.mubr.bf16.mxu1 %v3915_v2 }
 0x265   : > { %1694 = vmatmul.mubr.bf16.gmra.mrb[84].mxu1 %v4408_v25 }
 0x266   : > { %1703 = vmatprep.mubr.bf16.mxu1 %v3915_v2 }
 0x26d   : > { %1704 = vmatmul.mubr.bf16.gmra.mrb[88].mxu1 %v4432_v50 }
 0x26e   : > { %1713 = vmatprep.mubr.bf16.mxu1 %v3915_v2 }
 0x275   : > { %1714 = vmatmul.mubr.bf16.gmra.mrb[92].mxu1 %v4430_v49 }
 0x276   : > { %1723 = vmatprep.mubr.bf16.mxu1 %v3915_v2 }
 0x27d   : > { %1724 = vmatmul.mubr.bf16.gmra.mrb[96].mxu1 %v4452_v13 }
 0x27e   : > { %1733 = vmatprep.mubr.bf16.mxu1 %v3915_v2 }
 0x285   : > { %1734 = vmatmul.mubr.bf16.gmra.mrb[100].mxu1 %v4450_v12 }
 0x286   : > { %1743 = vmatprep.mubr.bf16.mxu1 %v3915_v2 }
 0x28d   : > { %1744 = vmatmul.mubr.bf16.gmra.mrb[104].mxu1 %v4462_v39 }
 0x28e   : > { %1753 = vmatprep.mubr.bf16.mxu1 %v3915_v2 }
 0x295   : > { %1754 = vmatmul.mubr.bf16.gmra.mrb[108].mxu1 %v4460_v37 }
 0x296   : > { %1763 = vmatprep.mubr.bf16.mxu1 %v3915_v2 }
 0x29d   : > { %1764 = vmatmul.mubr.bf16.gmra.mrb[112].mxu1 %v4472_v5 }
 0x29e   : > { %1773 = vmatprep.mubr.bf16.mxu1 %v3915_v2 }
 0x2a5   : > { %1774 = vmatmul.mubr.bf16.gmra.mrb[116].mxu1 %v4470_v1 }
 0x2a6   : > { %1783 = vmatprep.mubr.bf16.mxu1 %v3915_v2 }
 0x2ad   : > { %1784 = vmatmul.mubr.bf16.gmra.mrb[120].mxu1 %v1163_v35 }
 0x2ae   : > { %1793 = vmatprep.mubr.bf16.mxu1 %v3915_v2 }
 0x2b0   : > { %v1525_v9 = vpop.f32.mrb[16].mxu1 }
 0x2b1   : > { %v1527_v3 = vpop.f32.mrb[17].mxu1 }
 0x2b2   : > { %v1529_v4 = vpop.f32.mrb[18].mxu1 }
 0x2b3   : > { %v1852_v25 = vpack.c.bf16 %v1529_v4, %v1525_v9  ;;  %v1531_v26 = vpop.f32.mrb[19].mxu1 }
 0x2b4   : > { %v4521_v49 = vpack.c.bf16 %v1531_v26, %v1527_v3 }
 0x2b5   : > { %1794 = vmatmul.mubr.bf16.gmra.mrb[124].mxu1 %v4480_v33  ;;  %3192 = vmatprep.subr.bf16.mxu0 %v1852_v25 }
 0x2b6   : > { %3193 = vmatpush3.bf16.xpose.msra.mxu0 %v1852_v25  ;;  %1803 = vmatprep.mubr.bf16.mxu1 %v3915_v2 }
 0x2b8   : > { %v1535_v50 = vpop.f32.mrb[20].mxu1 }
 0x2b9   : > { %v1537_v12 = vpop.f32.mrb[21].mxu1 }
 0x2ba   : > { %v1539_v13 = vpop.f32.mrb[22].mxu1 }
 0x2bb   : > { %v1853_v37 = vpack.c.bf16 %v1539_v13, %v1535_v50  ;;  %v1541_v39 = vpop.f32.mrb[23].mxu1 }
 0x2bc   : > { %v4525_v1 = vpack.c.bf16 %v1541_v39, %v1537_v12 }
 0x2bd   : > { %1804 = vmatmul.mubr.bf16.gmra.mrb[128].mxu1 %v1165_v61  ;;  %3194 = vmatprep.subr.bf16.mxu0 %v1853_v37 }
 0x2be   : > { %3195 = vmatpush3.bf16.xpose.msra.mxu0 %v1853_v37  ;;  %1813 = vmatprep.mubr.bf16.mxu1 %v3915_v2 }
 0x2c0   : > { %v1545_v5 = vpop.f32.mrb[24].mxu1 }
 0x2c1   : > { %v1547_v35 = vpop.f32.mrb[25].mxu1 }
 0x2c2   : > { %v1549_v46 = vpop.f32.mrb[26].mxu1 }
 0x2c3   : > { %v1854_v33 = vpack.c.bf16 %v1549_v46, %v1545_v5  ;;  %v1551_v41 = vpop.f32.mrb[27].mxu1 }
 0x2c4   : > { %v4528_v31 = vpack.c.bf16 %v1551_v41, %v1547_v35 }
 0x2c5   : > { %1814 = vmatmul.mubr.bf16.gmra.mrb[132].mxu1 %v4488_v60  ;;  %3196 = vmatprep.subr.bf16.mxu0 %v1854_v33 }
 0x2c6   : > { %3197 = vmatpush3.bf16.xpose.msra.mxu0 %v1854_v33  ;;  %1823 = vmatprep.mubr.bf16.mxu1 %v3915_v2 }
 0x2c8   : > { %v1555_v43 = vpop.f32.mrb[28].mxu1 }
 0x2c9   : > { %v1557_v48 = vpop.f32.mrb[29].mxu1 }
 0x2ca   : > { %v1559_v51 = vpop.f32.mrb[30].mxu1 }
 0x2cb   : > { %v1855_v52 = vpack.c.bf16 %v1559_v51, %v1555_v43  ;;  %v1561_v53 = vpop.f32.mrb[31].mxu1 }
 0x2cc   : > { %v4532_v54 = vpack.c.bf16 %v1561_v53, %v1557_v48 }
 0x2cd   : > { %1824 = vmatmul.mubr.bf16.gmra.mrb[136].mxu1 %v1167_v36  ;;  %3198 = vmatprep.subr.bf16.mxu0 %v1855_v52 }
 0x2ce   : > { %3199 = vmatpush3.bf16.xpose.msra.mxu0 %v1855_v52  ;;  %1833 = vmatprep.mubr.bf16.mxu1 %v3915_v2 }
 0x2d0   : > { %v1565_v55 = vpop.f32.mrb[32].mxu1 }
 0x2d1   : > { %v1567_v58 = vpop.f32.mrb[33].mxu1 }
 0x2d2   : > { %v1569_v61 = vpop.f32.mrb[34].mxu1 }
 0x2d3   : > { %v1856_v60 = vpack.c.bf16 %v1569_v61, %v1565_v55  ;;  %v1571_v7 = vpop.f32.mrb[35].mxu1 }
 0x2d4   : > { %v4535_v45 = vpack.c.bf16 %v1571_v7, %v1567_v58 }
 0x2d5   : > { %1834 = vmatmul.mubr.bf16.gmra.mrb[140].mxu1 %v4496_v32  ;;  %3200 = vmatprep.subr.bf16.mxu0 %v1856_v60 }
 0x2d6   : > { %3201 = vmatpush3.bf16.xpose.msra.mxu0 %v1856_v60  ;;  %3268 = vmatprep.mubr.bf16.mxu1 %v1850_v8 }
 0x2d8   : > { %v1575_v30 = vpop.f32.mrb[36].mxu1 }
 0x2d9   : > { %v1577_v10 = vpop.f32.mrb[37].mxu1 }
 0x2da   : > { %v1579_v14 = vpop.f32.mrb[38].mxu1 }
 0x2db   : > { %v1857_v18 = vpack.c.bf16 %v1579_v14, %v1575_v30  ;;  %v1581_v2 = vpop.f32.mrb[39].mxu1 }
 0x2dc   : > { %v4541_v19 = vpack.c.bf16 %v1581_v2, %v1577_v10 }
 0x2dd   : > { %3202 = vmatprep.subr.bf16.mxu0 %v1857_v18 }
 0x2de   : > { %3203 = vmatpush3.bf16.xpose.msra.mxu0 %v1857_v18 }
 0x2e0   : > { %v1585_v21 = vpop.f32.mrb[40].mxu1 }
 0x2e1   : > { %v1587_v24 = vpop.f32.mrb[41].mxu1 }
 0x2e2   : > { %v1589_v27 = vpop.f32.mrb[42].mxu1 }
 0x2e3   : > { %v1858_v28 = vpack.c.bf16 %v1589_v27, %v1585_v21  ;;  %v1591_v29 = vpop.f32.mrb[43].mxu1 }
 0x2e4   : > { %v4543_v32 = vpack.c.bf16 %v1591_v29, %v1587_v24 }
 0x2e5   : > { %3204 = vmatprep.subr.bf16.mxu0 %v1858_v28 }
 0x2e6   : > { %3205 = vmatpush3.bf16.xpose.msra.mxu0 %v1858_v28 }
 0x2e8   : > { %v1595_v57 = vpop.f32.mrb[44].mxu1 }
 0x2e9   : > { %v1597_v16 = vpop.f32.mrb[45].mxu1 }
 0x2ea   : > { %v1599_v8 = vpop.f32.mrb[46].mxu1 }
 0x2eb   : > { %v1859_v36 = vpack.c.bf16 %v1599_v8, %v1595_v57  ;;  %v1601_v9 = vpop.f32.mrb[47].mxu1 }
 0x2ec   : > { %v4545_v3 = vpack.c.bf16 %v1601_v9, %v1597_v16 }
 0x2ed   : > { %3206 = vmatprep.subr.bf16.mxu0 %v1859_v36 }
 0x2ee   : > { %3207 = vmatpush3.bf16.xpose.msra.mxu0 %v1859_v36 }
 0x2f0   : > { %v1605_v4 = vpop.f32.mrb[48].mxu1 }
 0x2f1   : > { %v1607_v25 = vpop.f32.mrb[49].mxu1 }
 0x2f2   : > { %v1609_v26 = vpop.f32.mrb[50].mxu1 }
 0x2f3   : > { %v1860_v50 = vpack.c.bf16 %v1609_v26, %v1605_v4  ;;  %v1611_v12 = vpop.f32.mrb[51].mxu1 }
 0x2f4   : > { %v4547_v13 = vpack.c.bf16 %v1611_v12, %v1607_v25 }
 0x2f5   : > { %3209 = vmatmul.mubr.bf16.vlgmr.msra.gmra.mrb[64].mxu0 %v1845_v59  ;;  %3212 = vmatprep.subr.bf16.mxu0 %v1860_v50 }
 0x2f6   : > { %3213 = vmatpush3.bf16.xpose.msra.mxu0 %v1860_v50  ;;  %3228 = vmatprep.mubr.bf16.mxu0 %v1846_v22 }
 0x2f8   : > { %v1615_v37 = vpop.f32.mrb[52].mxu1 }
 0x2f9   : > { %v1617_v39 = vpop.f32.mrb[53].mxu1 }
 0x2fa   : > { %v1619_v5 = vpop.f32.mrb[54].mxu1 }
 0x2fb   : > { %v1861_v35 = vpack.c.bf16 %v1619_v5, %v1615_v37  ;;  %v1621_v46 = vpop.f32.mrb[55].mxu1 }
 0x2fc   : > { %v4555_v33 = vpack.c.bf16 %v1621_v46, %v1617_v39 }
 0x2fd   : > { %3214 = vmatprep.subr.bf16.mxu0 %v1861_v35 }
 0x2fe   : > { %3215 = vmatpush3.bf16.xpose.msra.mxu0 %v1861_v35 }
 0x300   : > { %v1625_v41 = vpop.f32.mrb[56].mxu1 }
 0x301   : > { %v1627_v43 = vpop.f32.mrb[57].mxu1 }
 0x302   : > { %v1629_v48 = vpop.f32.mrb[58].mxu1 }
 0x303   : > { %v1862_v40 = vpack.c.bf16 %v1629_v48, %v1625_v41  ;;  %v1631_v56 = vpop.f32.mrb[59].mxu1 }
 0x304   : > { %v4557_v59 = vpack.c.bf16 %v1631_v56, %v1627_v43 }
 0x305   : > { %3216 = vmatprep.subr.bf16.mxu0 %v1862_v40 }
 0x306   : > { %3217 = vmatpush3.bf16.xpose.msra.mxu0 %v1862_v40 }
 0x308   : > { %v1635_v11 = vpop.f32.mrb[60].mxu1 }
 0x309   : > { %v1637_v0 = vpop.f32.mrb[61].mxu1 }
 0x30a   : > { %v1639_v22 = vpop.f32.mrb[62].mxu1 }
 0x30b   : > { %v1863_v51 = vpack.c.bf16 %v1639_v22, %v1635_v11  ;;  %v1641_v52 = vpop.f32.mrb[63].mxu1 }
 0x30c   : > { %v4559_v53 = vpack.c.bf16 %v1641_v52, %v1637_v0 }
 0x30d   : > { %3218 = vmatprep.subr.bf16.mxu0 %v1863_v51 }
 0x30e   : > { %3219 = vmatpush3.bf16.xpose.msra.mxu0 %v1863_v51 }
 0x310   : > { %v1645_v55 = vpop.f32.mrb[64].mxu1 }
 0x311   : > { %v1647_v58 = vpop.f32.mrb[65].mxu1 }
 0x312   : > { %v1649_v61 = vpop.f32.mrb[66].mxu1 }
 0x313   : > { %v1864_v60 = vpack.c.bf16 %v1649_v61, %v1645_v55  ;;  %v1651_v7 = vpop.f32.mrb[67].mxu1 }
 0x314   : > { %v4561_v30 = vpack.c.bf16 %v1651_v7, %v1647_v58 }
 0x315   : > { %3220 = vmatprep.subr.bf16.mxu0 %v1864_v60 }
 0x316   : > { %3221 = vmatpush3.bf16.xpose.msra.mxu0 %v1864_v60 }
 0x318   : > { %v1655_v10 = vpop.f32.mrb[68].mxu1 }
 0x319   : > { %v1657_v14 = vpop.f32.mrb[69].mxu1 }
 0x31a   : > { %v1659_v18 = vpop.f32.mrb[70].mxu1 }
 0x31b   : > { %v1865_v2 = vpack.c.bf16 %v1659_v18, %v1655_v10  ;;  %v1661_v21 = vpop.f32.mrb[71].mxu1 }
 0x31c   : > { %v4563_v24 = vpack.c.bf16 %v1661_v21, %v1657_v14 }
 0x31d   : > { %3222 = vmatprep.subr.bf16.mxu0 %v1865_v2 }
 0x31e   : > { %3223 = vmatpush3.bf16.xpose.msra.mxu0 %v1865_v2 }
 0x320   : > { %v1665_v27 = vpop.f32.mrb[72].mxu1 }
 0x321   : > { %v1667_v28 = vpop.f32.mrb[73].mxu1 }
 0x322   : > { %v1669_v29 = vpop.f32.mrb[74].mxu1 }
 0x323   : > { %v1866_v57 = vpack.c.bf16 %v1669_v29, %v1665_v27  ;;  %v1671_v16 = vpop.f32.mrb[75].mxu1 }
 0x324   : > { %v4565_v8 = vpack.c.bf16 %v1671_v16, %v1667_v28 }
 0x325   : > { %3224 = vmatprep.subr.bf16.mxu0 %v1866_v57 }
 0x326   : > { %3225 = vmatpush3.bf16.xpose.msra.mxu0 %v1866_v57 }
 0x328   : > { %v1675_v36 = vpop.f32.mrb[76].mxu1 }
 0x329   : > { %v1677_v9 = vpop.f32.mrb[77].mxu1 }
 0x32a   : > { %v1679_v4 = vpop.f32.mrb[78].mxu1 }
 0x32b   : > { %v1867_v25 = vpack.c.bf16 %v1679_v4, %v1675_v36  ;;  %v1681_v26 = vpop.f32.mrb[79].mxu1 }
 0x32c   : > { %v4567_v50 = vpack.c.bf16 %v1681_v26, %v1677_v9 }
 0x32d   : > { %3226 = vmatprep.subr.bf16.mxu0 %v1867_v25 }
 0x32e   : > { %3227 = vmatpush3.bf16.xpose.msra.mxu0 %v1867_v25 }
 0x330   : > { %v1685_v12 = vpop.f32.mrb[80].mxu1 }
 0x331   : > { %v1687_v37 = vpop.f32.mrb[81].mxu1 }
 0x332   : > { %v1689_v39 = vpop.f32.mrb[82].mxu1 }
 0x333   : > { %v1868_v5 = vpack.c.bf16 %v1689_v39, %v1685_v12  ;;  %v1691_v35 = vpop.f32.mrb[83].mxu1 }
 0x334   : > { %v4569_v46 = vpack.c.bf16 %v1691_v35, %v1687_v37 }
 0x335   : > { %3229 = vmatmul.mubr.bf16.vlgmr.msra.gmra.mrb[68].mxu0 %v1847_v20  ;;  %3232 = vmatprep.subr.bf16.mxu0 %v1868_v5 }
 0x336   : > { %3233 = vmatpush3.bf16.xpose.msra.mxu0 %v1868_v5  ;;  %3248 = vmatprep.mubr.bf16.mxu0 %v1848_v44 }
 0x338   : > { %v1695_v41 = vpop.f32.mrb[84].mxu1 }
 0x339   : > { %v1697_v43 = vpop.f32.mrb[85].mxu1 }
 0x33a   : > { %v1699_v48 = vpop.f32.mrb[86].mxu1 }
 0x33b   : > { %v1869_v40 = vpack.c.bf16 %v1699_v48, %v1695_v41  ;;  %v1701_v56 = vpop.f32.mrb[87].mxu1 }
 0x33c   : > { %v4577_v11 = vpack.c.bf16 %v1701_v56, %v1697_v43 }
 0x33d   : > { %3234 = vmatprep.subr.bf16.mxu0 %v1869_v40 }
 0x33e   : > { %3235 = vmatpush3.bf16.xpose.msra.mxu0 %v1869_v40 }
 0x340   : > { %v1705_v0 = vpop.f32.mrb[88].mxu1 }
 0x341   : > { %v1707_v22 = vpop.f32.mrb[89].mxu1 }
 0x342   : > { %v1709_v51 = vpop.f32.mrb[90].mxu1 }
 0x343   : > { %v1870_v63 = vpack.c.bf16 %v1709_v51, %v1705_v0  ;;  %v1711_v15 = vpop.f32.mrb[91].mxu1 }
 0x344   : > { %v4579_v20 = vpack.c.bf16 %v1711_v15, %v1707_v22 }
 0x345   : > { %3236 = vmatprep.subr.bf16.mxu0 %v1870_v63 }
 0x346   : > { %3237 = vmatpush3.bf16.xpose.msra.mxu0 %v1870_v63 }
 0x348   : > { %v1715_v34 = vpop.f32.mrb[92].mxu1 }
 0x349   : > { %v1717_v17 = vpop.f32.mrb[93].mxu1 }
 0x34a   : > { %v1719_v44 = vpop.f32.mrb[94].mxu1 }
 0x34b   : > { %v1871_v52 = vpack.c.bf16 %v1719_v44, %v1715_v34  ;;  %v1721_v55 = vpop.f32.mrb[95].mxu1 }
 0x34c   : > { %v4581_v58 = vpack.c.bf16 %v1721_v55, %v1717_v17 }
 0x34d   : > { %3238 = vmatprep.subr.bf16.mxu0 %v1871_v52 }
 0x34e   : > { %3239 = vmatpush3.bf16.xpose.msra.mxu0 %v1871_v52 }
 0x350   : > { %v1725_v61 = vpop.f32.mrb[96].mxu1 }
 0x351   : > { %v1727_v60 = vpop.f32.mrb[97].mxu1 }
 0x352   : > { %v1729_v7 = vpop.f32.mrb[98].mxu1 }
 0x353   : > { %v1872_v10 = vpack.c.bf16 %v1729_v7, %v1725_v61  ;;  %v1731_v14 = vpop.f32.mrb[99].mxu1 }
 0x354   : > { %v4583_v18 = vpack.c.bf16 %v1731_v14, %v1727_v60 }
 0x355   : > { %3240 = vmatprep.subr.bf16.mxu0 %v1872_v10 }
 0x356   : > { %3241 = vmatpush3.bf16.xpose.msra.mxu0 %v1872_v10 }
 0x358   : > { %v1735_v2 = vpop.f32.mrb[100].mxu1 }
 0x359   : > { %v1737_v21 = vpop.f32.mrb[101].mxu1 }
 0x35a   : > { %v1739_v27 = vpop.f32.mrb[102].mxu1 }
 0x35b   : > { %v1873_v28 = vpack.c.bf16 %v1739_v27, %v1735_v2  ;;  %v1741_v29 = vpop.f32.mrb[103].mxu1 }
 0x35c   : > { %v4585_v57 = vpack.c.bf16 %v1741_v29, %v1737_v21 }
 0x35d   : > { %3242 = vmatprep.subr.bf16.mxu0 %v1873_v28 }
 0x35e   : > { %3243 = vmatpush3.bf16.xpose.msra.mxu0 %v1873_v28 }
 0x360   : > { %v1745_v16 = vpop.f32.mrb[104].mxu1 }
 0x361   : > { %v1747_v36 = vpop.f32.mrb[105].mxu1 }
 0x362   : > { %v1749_v9 = vpop.f32.mrb[106].mxu1 }
 0x363   : > { %v1874_v4 = vpack.c.bf16 %v1749_v9, %v1745_v16  ;;  %v1751_v25 = vpop.f32.mrb[107].mxu1 }
 0x364   : > { %v4587_v26 = vpack.c.bf16 %v1751_v25, %v1747_v36 }
 0x365   : > { %3244 = vmatprep.subr.bf16.mxu0 %v1874_v4 }
 0x366   : > { %3245 = vmatpush3.bf16.xpose.msra.mxu0 %v1874_v4 }
 0x368   : > { %v1755_v12 = vpop.f32.mrb[108].mxu1 }
 0x369   : > { %v1757_v37 = vpop.f32.mrb[109].mxu1 }
 0x36a   : > { %v1759_v39 = vpop.f32.mrb[110].mxu1 }
 0x36b   : > { %v1875_v5 = vpack.c.bf16 %v1759_v39, %v1755_v12  ;;  %v1761_v35 = vpop.f32.mrb[111].mxu1 }
 0x36c   : > { %v4589_v41 = vpack.c.bf16 %v1761_v35, %v1757_v37 }
 0x36d   : > { %3246 = vmatprep.subr.bf16.mxu0 %v1875_v5 }
 0x36e   : > { %3247 = vmatpush3.bf16.xpose.msra.mxu0 %v1875_v5 }
 0x36f   : > { %3272 = vmatprep.subr.bf16.mxu0 %v4521_v49 }
 0x370   : > { %v1765_v43 = vpop.f32.mrb[112].mxu1 }
 0x371   : > { %v1767_v48 = vpop.f32.mrb[113].mxu1 }
 0x372   : > { %v1769_v40 = vpop.f32.mrb[114].mxu1 }
 0x373   : > { %v1876_v56 = vpack.c.bf16 %v1769_v40, %v1765_v43  ;;  %v1771_v0 = vpop.f32.mrb[115].mxu1 }
 0x374   : > { %v4592_v22 = vpack.c.bf16 %v1771_v0, %v1767_v48 }
 0x375   : > { %3249 = vmatmul.mubr.bf16.vlgmr.msra.gmra.mrb[72].mxu0 %v1849_v42  ;;  %3252 = vmatprep.subr.bf16.mxu1 %v1876_v56 }
 0x376   : > { %3253 = vmatpush3.bf16.xpose.msra.mxu1 %v1876_v56  ;;  %3273 = vmatpush3.bf16.msra.mxu0 %v4521_v49  ;;  %v2112_v56 = vlaneseq }
 0x377   : > { %3274 = vmatprep.subr.bf16.mxu0 %v4525_v1 }
 0x378   : > { %v1775_v51 = vpop.f32.mrb[116].mxu1  ;;  %v4642_v47 = vand.u32 127, %v2112_v56 }
 0x379   : > { %v1777_v63 = vpop.f32.mrb[117].mxu1 }
 0x37a   : > { %v1779_v15 = vpop.f32.mrb[118].mxu1  ;;  %3275 = vmatpush3.bf16.msra.mxu0 %v4525_v1  ;;  %vm2118_vm0 = vcmp.lt.s32.totalorder %v4642_v47, %v2114_v62 }
 0x37b   : > { %v1877_v34 = vpack.c.bf16 %v1779_v15, %v1775_v51  ;;  %v1781_v17 = vpop.f32.mrb[119].mxu1  ;;  %3276 = vmatprep.subr.bf16.mxu0 %v4528_v31 }
 0x37c   : > { %v4601_v44 = vpack.c.bf16 %v1781_v17, %v1777_v63  ;;  %v2115_v63 = vstv %s1132_s11 }
 0x37d   : > { %3254 = vmatprep.subr.bf16.mxu1 %v1877_v34  ;;  %vm2119_vm1 = vcmp.lt.s32.totalorder %v4642_v47, %v2115_v63 }
 0x37e   : > { %3255 = vmatpush3.bf16.xpose.msra.mxu1 %v1877_v34  ;;  %3277 = vmatpush3.bf16.msra.mxu0 %v4528_v31 }
 0x37f   : > { %3278 = vmatprep.subr.bf16.mxu0 %v4532_v54 }
 0x380   : > { %v1785_v23 = vpop.f32.mrb[120].mxu1 }
 0x381   : > { %v1787_v38 = vpop.f32.mrb[121].mxu1 }
 0x382   : > { %v1789_v42 = vpop.f32.mrb[122].mxu1  ;;  %3279 = vmatpush3.bf16.msra.mxu0 %v4532_v54 }
 0x383   : > { %v1878_v49 = vpack.c.bf16 %v1789_v42, %v1785_v23  ;;  %3280 = vmatprep.subr.bf16.mxu0 %v4535_v45  ;;  %v1791_v1 = vpop.f32.mrb[123].mxu1  ;;  %v2116_v42 = vstv %s1134_s25 }
 0x384   : > { %v4607_v52 = vpack.c.bf16 %v1791_v1, %v1787_v38  ;;  %vm2120_vm2 = vcmp.lt.s32.totalorder %v4642_v47, %v2116_v42 }
 0x385   : > { %3256 = vmatprep.subr.bf16.mxu1 %v1878_v49 }
 0x386   : > { %3257 = vmatpush3.bf16.xpose.msra.mxu1 %v1878_v49  ;;  %3281 = vmatpush3.bf16.msra.mxu0 %v4535_v45 }
 0x387   : > { %3282 = vmatprep.subr.bf16.mxu0 %v4541_v19 }
 0x388   : > { %v1795_v31 = vpop.f32.mrb[124].mxu1 }
 0x389   : > { %v1797_v55 = vpop.f32.mrb[125].mxu1 }
 0x38a   : > { %v1799_v61 = vpop.f32.mrb[126].mxu1  ;;  %3283 = vmatpush3.bf16.msra.mxu0 %v4541_v19 }
 0x38b   : > { %v1879_v60 = vpack.c.bf16 %v1799_v61, %v1795_v31  ;;  %3284 = vmatprep.subr.bf16.mxu0 %v4543_v32  ;;  %v1801_v54 = vpop.f32.mrb[127].mxu1 }
 0x38c   : > { %v4613_v7 = vpack.c.bf16 %v1801_v54, %v1797_v55 }
 0x38d   : > { %3258 = vmatprep.subr.bf16.mxu1 %v1879_v60 }
 0x38e   : > { %3259 = vmatpush3.bf16.xpose.msra.mxu1 %v1879_v60  ;;  %3285 = vmatpush3.bf16.msra.mxu0 %v4543_v32 }
 0x38f   : > { %3286 = vmatprep.subr.bf16.mxu0 %v4545_v3 }
 0x390   : > { %v1805_v45 = vpop.f32.mrb[128].mxu1 }
 0x391   : > { %v1807_v10 = vpop.f32.mrb[129].mxu1 }
 0x392   : > { %v1809_v14 = vpop.f32.mrb[130].mxu1  ;;  %3287 = vmatpush3.bf16.msra.mxu0 %v4545_v3 }
 0x393   : > { %v1880_v2 = vpack.c.bf16 %v1809_v14, %v1805_v45  ;;  %3292 = vmatprep.subr.bf16.mxu0 %v4547_v13  ;;  %v1811_v19 = vpop.f32.mrb[131].mxu1 }
 0x394   : > { %v4619_v21 = vpack.c.bf16 %v1811_v19, %v1807_v10 }
 0x395   : > { %3260 = vmatprep.subr.bf16.mxu1 %v1880_v2 }
 0x396   : > { %3261 = vmatpush3.bf16.xpose.msra.mxu1 %v1880_v2 }
 0x398   : > { %v1815_v27 = vpop.f32.mrb[132].mxu1 }
 0x399   : > { %v1817_v28 = vpop.f32.mrb[133].mxu1 }
 0x39a   : > { %v1819_v29 = vpop.f32.mrb[134].mxu1 }
 0x39b   : > { %v1881_v16 = vpack.c.bf16 %v1819_v29, %v1815_v27  ;;  %v1821_v32 = vpop.f32.mrb[135].mxu1 }
 0x39c   : > { %v4621_v36 = vpack.c.bf16 %v1821_v32, %v1817_v28  ;;  %v2117_v32 = vstv %s1136_s29 }
 0x39d   : > { %3262 = vmatprep.subr.bf16.mxu1 %v1881_v16  ;;  %vm4683_vm3 = vcmp.lt.s32.totalorder %v4642_v47, %v2117_v32 }
 0x39e   : > { %3263 = vmatpush3.bf16.xpose.msra.mxu1 %v1881_v16 }
 0x3a0   : > { %v1825_v9 = vpop.f32.mrb[136].mxu1 }
 0x3a1   : > { %v1827_v4 = vpop.f32.mrb[137].mxu1 }
 0x3a2   : > { %v1829_v3 = vpop.f32.mrb[138].mxu1 }
 0x3a3   : > { %v1882_v25 = vpack.c.bf16 %v1829_v3, %v1825_v9  ;;  %v1831_v12 = vpop.f32.mrb[139].mxu1 }
 0x3a4   : > { %v4623_v37 = vpack.c.bf16 %v1831_v12, %v1827_v4 }
 0x3a5   : > { %3264 = vmatprep.subr.bf16.mxu1 %v1882_v25 }
 0x3a6   : > { %3265 = vmatpush3.bf16.xpose.msra.mxu1 %v1882_v25 }
 0x3a8   : > { %v1835_v39 = vpop.f32.mrb[140].mxu1 }
 0x3a9   : > { %v1837_v5 = vpop.f32.mrb[141].mxu1 }
 0x3aa   : > { %v1839_v35 = vpop.f32.mrb[142].mxu1 }
 0x3ab   : > { %v1883_v43 = vpack.c.bf16 %v1839_v35, %v1835_v39  ;;  %v1841_v48 = vpop.f32.mrb[143].mxu1 }
 0x3ac   : > { %v4625_v40 = vpack.c.bf16 %v1841_v48, %v1837_v5 }
 0x3ad   : > { %3266 = vmatprep.subr.bf16.mxu1 %v1883_v43 }
 0x3ae   : > { %3267 = vmatpush3.bf16.xpose.msra.mxu1 %v1883_v43 }
 0x3af   : > { %3312 = vmatprep.subr.bf16.mxu1 %v4569_v46 }
 0x3b5   : > { %3269 = vmatmul.mubr.bf16.vlgmr.msra.gmra.mrb[144].mxu1 %v1851_v6 }
 0x3b6   : > { %3313 = vmatpush3.bf16.msra.mxu1 %v4569_v46 }
 0x3b7   : > { %3314 = vmatprep.subr.bf16.mxu1 %v4577_v11 }
 0x3ba   : > { %3315 = vmatpush3.bf16.msra.mxu1 %v4577_v11 }
 0x3bb   : > { %3316 = vmatprep.subr.bf16.mxu1 %v4579_v20 }
 0x3be   : > { %3317 = vmatpush3.bf16.msra.mxu1 %v4579_v20 }
 0x3bf   : > { %3318 = vmatprep.subr.bf16.mxu1 %v4581_v58 }
 0x3c2   : > { %3319 = vmatpush3.bf16.msra.mxu1 %v4581_v58 }
 0x3c3   : > { %3320 = vmatprep.subr.bf16.mxu1 %v4583_v18 }
 0x3c6   : > { %3321 = vmatpush3.bf16.msra.mxu1 %v4583_v18 }
 0x3c7   : > { %3322 = vmatprep.subr.bf16.mxu1 %v4585_v57 }
 0x3c8   : > { %v3210_v6 = vpop.f32.mrb[64].mxu0 }
 0x3c9   : > { %v1950_v46 = vpop.f32.mrb[65].mxu0  ;;  %v2124_v11 = vsel %vm2118_vm0, %v3210_v6, -1e+30 }
 0x3ca   : > { %2142 = vmax.xlane.f32.xlu1 %v2124_v11  ;;  %v3211_v20 = vpop.f32.mrb[66].mxu0  ;;  %3323 = vmatpush3.bf16.msra.mxu1 %v4585_v57  ;;  %v2122_v58 = vsel %vm2118_vm0, %v1950_v46, -1e+30 }
 0x3cb   : > { %2138 = vmax.xlane.f32.xlu0 %v2122_v58  ;;  %v1953_v0 = vpop.f32.mrb[67].mxu0  ;;  %3324 = vmatprep.subr.bf16.mxu1 %v4587_v26  ;;  %v2125_v51 = vsel %vm2118_vm0, %v3211_v20, -1e+30 }
 0x3cc   : > { %v2123_v18 = vsel %vm2118_vm0, %v1953_v0, -1e+30 }
 0x3ce   : > { %2144 = vmax.xlane.f32.xlu1 %v2125_v51  ;;  %3325 = vmatpush3.bf16.msra.mxu1 %v4587_v26 }
 0x3cf   : > { %2140 = vmax.xlane.f32.xlu0 %v2123_v18  ;;  %3326 = vmatprep.subr.bf16.mxu1 %v4589_v41 }
 0x3d2   : > { %3327 = vmatpush3.bf16.msra.mxu1 %v4589_v41 }
 0x408   : > { %v3230_v57 = vpop.f32.mrb[68].mxu0 }
 0x409   : > { %v1999_v15 = vpop.f32.mrb[69].mxu0  ;;  %v4661_v38 = vsel %vm2119_vm1, %v3230_v57, -1e+30 }
 0x40a   : > { %v3231_v34 = vpop.f32.mrb[70].mxu0  ;;  %v4655_v17 = vsel %vm2119_vm1, %v1999_v15, -1e+30 }
 0x40b   : > { %2146 = vmax.xlane.f32.xlu0 %v4655_v17  ;;  %v2002_v26 = vpop.f32.mrb[71].mxu0  ;;  %v4664_v41 = vsel %vm2119_vm1, %v3231_v34, -1e+30 }
 0x40c   : > { %v4658_v23 = vsel %vm2119_vm1, %v2002_v26, -1e+30 }
 0x40d   : > { %2148 = vmax.xlane.f32.xlu1 %v4658_v23 }
 0x40f   : > { %2150 = vmax.xlane.f32.xlu0 %v4661_v38 }
 0x411   : > { %2152 = vmax.xlane.f32.xlu1 %v4664_v41 }
 0x448   : > { %v3250_v49 = vpop.f32.mrb[72].mxu0 }
 0x449   : > { %v2048_v1 = vpop.f32.mrb[73].mxu0  ;;  %v4675_v54 = vsel %vm2120_vm2, %v3250_v49, -1e+30 }
 0x44a   : > { %v3251_v31 = vpop.f32.mrb[74].mxu0  ;;  %v4669_v55 = vsel %vm2120_vm2, %v2048_v1, -1e+30 }
 0x44b   : > { %2154 = vmax.xlane.f32.xlu0 %v4669_v55  ;;  %v2051_v61 = vpop.f32.mrb[75].mxu0  ;;  %v4678_v45 = vsel %vm2120_vm2, %v3251_v31, -1e+30 }
 0x44c   : > { %v4672_v60 = vsel %vm2120_vm2, %v2051_v61, -1e+30 }
 0x44d   : > { %2156 = vmax.xlane.f32.xlu1 %v4672_v60 }
 0x44f   : > { %2158 = vmax.xlane.f32.xlu0 %v4675_v54 }
 0x451   : > { %2160 = vmax.xlane.f32.xlu1 %v4678_v45 }
 0x457   : > { %v2143_v14 = vpop.xlane.xlu1 %2142 }
 0x458   : > { %v2139_v10 = vpop.xlane.xlu0 %2138  ;;  %v2172_v29 = vsub.f32 %v2124_v11, %v2143_v14 }
 0x459   : > { %v2170_v19 = vsub.f32 %v2122_v58, %v2139_v10 }
 0x45a   : > { %v2190_v25 = vmul.f32 1.442695, %v2172_v29 }
 0x45b   : > { %v2145_v28 = vpop.xlane.xlu1 %2144  ;;  %v2186_v16 = vmul.f32 1.442695, %v2170_v19 }
 0x45c   : > { %v2141_v2 = vpop.xlane.xlu0 %2140  ;;  %v2173_v9 = vsub.f32 %v2125_v51, %v2145_v28 }
 0x45d   : > { %v2171_v27 = vsub.f32 %v2123_v18, %v2141_v2  ;;  %3572 = vpow2.f32 %v2186_v16 }
 0x45e   : > { %v2192_v5 = vmul.f32 1.442695, %v2173_v9 }
 0x45f   : > { %v2188_v4 = vmul.f32 1.442695, %v2171_v27 }
 0x461   : > { %3574 = vpow2.f32 %v2188_v4 }
 0x462   : > { %3576 = vpow2.f32 %v2190_v25 }
 0x463   : > { %3578 = vpow2.f32 %v2192_v5 }
 0x467   : > { %v4707_v6 = vpop.eup %3572 }
 0x46b   : > { %v4710_v46 = vpop.eup %3574 }
 0x46c   : > { %v4713_v11 = vpop.eup %3576 }
 0x46d   : > { %v4716_v20 = vpop.eup %3578 }
 0x488   : > { %v3270_v12 = vpop.f32.mrb[144].mxu1 }
 0x489   : > { %v2097_v39 = vpop.f32.mrb[145].mxu1  ;;  %v4699_v47 = vsel %vm4683_vm3, %v3270_v12, -1e+30 }
 0x48a   : > { %v3271_v35 = vpop.f32.mrb[146].mxu1  ;;  %v4689_v43 = vsel %vm4683_vm3, %v2097_v39, -1e+30 }
 0x48b   : > { %2162 = vmax.xlane.f32.xlu0 %v4689_v43  ;;  %v2100_v48 = vpop.f32.mrb[147].mxu1  ;;  %v4704_v62 = vsel %vm4683_vm3, %v3271_v35, -1e+30 }
 0x48c   : > { %v4694_v56 = vsel %vm4683_vm3, %v2100_v48, -1e+30 }
 0x48d   : > { %2164 = vmax.xlane.f32.xlu1 %v4694_v56 }
 0x48f   : > { %2166 = vmax.xlane.f32.xlu0 %v4699_v47 }
 0x491   : > { %2168 = vmax.xlane.f32.xlu1 %v4704_v62 }
 0x493   : > { %2218 = vadd.xlane.f32.xlu0 %v4707_v6 }
 0x495   : > { %2220 = vadd.xlane.f32.xlu1 %v4710_v46 }
 0x497   : > { %2222 = vadd.xlane.f32.xlu0 %v4713_v11 }
 0x498   : > { %v2147_v58 = vpop.xlane.xlu0 %2146 }
 0x499   : > { %v2174_v0 = vsub.f32 %v4655_v17, %v2147_v58  ;;  %2224 = vadd.xlane.f32.xlu1 %v4716_v20 }
 0x49a   : > { %v2149_v51 = vpop.xlane.xlu1 %2148 }
 0x49b   : > { %v2194_v18 = vmul.f32 1.442695, %v2174_v0  ;;  %v2175_v63 = vsub.f32 %v4658_v23, %v2149_v51 }
 0x49c   : > { %v2151_v57 = vpop.xlane.xlu0 %2150 }
 0x49d   : > { %3580 = vpow2.f32 %v2194_v18  ;;  %v2196_v15 = vmul.f32 1.442695, %v2175_v63  ;;  %v2176_v34 = vsub.f32 %v4661_v38, %v2151_v57 }
 0x49e   : > { %v2153_v26 = vpop.xlane.xlu1 %2152 }
 0x49f   : > { %3582 = vpow2.f32 %v2196_v15  ;;  %v2198_v42 = vmul.f32 1.442695, %v2176_v34  ;;  %v2177_v49 = vsub.f32 %v4664_v41, %v2153_v26 }
 0x4a1   : > { %3584 = vpow2.f32 %v2198_v42  ;;  %v2200_v1 = vmul.f32 1.442695, %v2177_v49 }
 0x4a3   : > { %3586 = vpow2.f32 %v2200_v1 }
 0x4a7   : > { %v4723_v17 = vpop.eup %3580 }
 0x4a8   : > { %2226 = vadd.xlane.f32.xlu0 %v4723_v17 }
 0x4a9   : > { %v4726_v31 = vpop.eup %3582 }
 0x4aa   : > { %2228 = vadd.xlane.f32.xlu1 %v4726_v31 }
 0x4ab   : > { %v4729_v23 = vpop.eup %3584 }
 0x4ac   : > { %2230 = vadd.xlane.f32.xlu0 %v4729_v23 }
 0x4ad   : > { %v4732_v38 = vpop.eup %3586 }
 0x4ae   : > { %2232 = vadd.xlane.f32.xlu1 %v4732_v38 }
 0x4d8   : > { %v2155_v41 = vpop.xlane.xlu0 %2154 }
 0x4d9   : > { %v2178_v61 = vsub.f32 %v4669_v55, %v2155_v41 }
 0x4da   : > { %v2157_v10 = vpop.xlane.xlu1 %2156 }
 0x4db   : > { %v2202_v14 = vmul.f32 1.442695, %v2178_v61  ;;  %v2179_v2 = vsub.f32 %v4672_v60, %v2157_v10 }
 0x4dc   : > { %v2159_v19 = vpop.xlane.xlu0 %2158 }
 0x4dd   : > { %3588 = vpow2.f32 %v2202_v14  ;;  %v2204_v27 = vmul.f32 1.442695, %v2179_v2  ;;  %v2180_v28 = vsub.f32 %v4675_v54, %v2159_v19 }
 0x4de   : > { %v2161_v29 = vpop.xlane.xlu1 %2160 }
 0x4df   : > { %3590 = vpow2.f32 %v2204_v27  ;;  %v2206_v16 = vmul.f32 1.442695, %v2180_v28  ;;  %v2181_v32 = vsub.f32 %v4678_v45, %v2161_v29 }
 0x4e1   : > { %3592 = vpow2.f32 %v2206_v16  ;;  %v2208_v9 = vmul.f32 1.442695, %v2181_v32 }
 0x4e3   : > { %3594 = vpow2.f32 %v2208_v9  ;;  %v3565_v9 = vld [vmem:[#allocation13 + $0x8] sm:$0xff]  }
 0x4e7   : > { %v4739_v4 = vpop.eup %3588 }
 0x4e8   : > { %2234 = vadd.xlane.f32.xlu0 %v4739_v4 }
 0x4e9   : > { %v4742_v55 = vpop.eup %3590 }
 0x4ea   : > { %2236 = vadd.xlane.f32.xlu1 %v4742_v55 }
 0x4eb   : > { %v4745_v60 = vpop.eup %3592 }
 0x4ec   : > { %2238 = vadd.xlane.f32.xlu0 %v4745_v60 }
 0x4ed   : > { %v4748_v54 = vpop.eup %3594 }
 0x4ee   : > { %2240 = vadd.xlane.f32.xlu1 %v4748_v54 }
 0x518   : > { %v2163_v45 = vpop.xlane.xlu0 %2162 }
 0x519   : > { %v2182_v3 = vsub.f32 %v4689_v43, %v2163_v45  ;;  %v3566_v45 = vld [vmem:[#allocation13 + $0x10] sm:$0xff]  }
 0x51a   : > { %v2165_v25 = vpop.xlane.xlu1 %2164 }
 0x51b   : > { %v2210_v12 = vmul.f32 1.442695, %v2182_v3  ;;  %v2183_v39 = vsub.f32 %v4694_v56, %v2165_v25  ;;  %v3567_v3 = vld [vmem:[#allocation13 + $0x18] sm:$0xff]  }
 0x51c   : > { %v2167_v5 = vpop.xlane.xlu0 %2166 }
 0x51d   : > { %3596 = vpow2.f32 %v2210_v12  ;;  %v2212_v35 = vmul.f32 1.442695, %v2183_v39  ;;  %v2184_v48 = vsub.f32 %v4699_v47, %v2167_v5 }
 0x51e   : > { %v2169_v58 = vpop.xlane.xlu1 %2168 }
 0x51f   : > { %3598 = vpow2.f32 %v2212_v35  ;;  %v2214_v0 = vmul.f32 1.442695, %v2184_v48  ;;  %v2185_v51 = vsub.f32 %v4704_v62, %v2169_v58 }
 0x520   : > { %v2219_v18 = vpop.xlane.xlu0 %2218 }
 0x521   : > { %3600 = vpow2.f32 %v2214_v0  ;;  %v2216_v63 = vmul.f32 1.442695, %v2185_v51 }
 0x522   : > { %3602 = vrcp.f32 %v2219_v18  ;;  %v2221_v57 = vpop.xlane.xlu1 %2220 }
 0x523   : > { %3604 = vpow2.f32 %v2216_v63 }
 0x524   : > { %3606 = vrcp.f32 %v2221_v57  ;;  %v2223_v43 = vpop.xlane.xlu0 %2222 }
 0x525   : > { %3608 = vrcp.f32 %v2223_v43 }
 0x526   : > { %v2225_v56 = vpop.xlane.xlu1 %2224 }
 0x527   : > { %v4755_v15 = vpop.eup %3596  ;;  %3610 = vrcp.f32 %v2225_v56 }
 0x528   : > { %2242 = vadd.xlane.f32.xlu0 %v4755_v15 }
 0x529   : > { %v4758_v47 = vpop.eup %3598 }
 0x52a   : > { %2244 = vadd.xlane.f32.xlu1 %v4758_v47 }
 0x52b   : > { %v4761_v62 = vpop.eup %3600 }
 0x52c   : > { %v3603_v34 = vpop.eup %3602  ;;  %2246 = vadd.xlane.f32.xlu0 %v4761_v62 }
 0x52d   : > { %v4764_v26 = vpop.eup %3604  ;;  %v2266_v1 = vmul.f32 %v3603_v34, %v4707_v6 }
 0x52e   : > { %v3607_v42 = vpop.eup %3606  ;;  %2248 = vadd.xlane.f32.xlu1 %v4764_v26 }
 0x52f   : > { %v3609_v49 = vpop.eup %3608  ;;  %v2267_v41 = vmul.f32 %v3607_v42, %v4710_v46 }
 0x530   : > { %v2268_v14 = vmul.f32 %v3609_v49, %v4713_v11 }
 0x531   : > { %v3611_v61 = vpop.eup %3610  ;;  %v2282_v10 = vpack.c.bf16 %v2267_v41, %v2266_v1 }
 0x532   : > { %v2269_v2 = vmul.f32 %v3611_v61, %v4716_v20 }
 0x533   : > { %3288 = vmatprep.mubr.bf16.mxu0 %v2282_v10 }
 0x534   : > { %v2283_v19 = vpack.c.bf16 %v2269_v2, %v2268_v14 }
 0x535   : > { %v2227_v27 = vpop.xlane.xlu0 %2226 }
 0x536   : > { %3612 = vrcp.f32 %v2227_v27  ;;  %3289 = vmatmul.mubr.bf16.vlgmr.msra.gmra.mrb[76].mxu0 %v2283_v19 }
 0x537   : > { %3293 = vmatpush3.bf16.msra.mxu0 %v4547_v13  ;;  %v2229_v28 = vpop.xlane.xlu1 %2228 }
 0x538   : > { %3294 = vmatprep.subr.bf16.mxu0 %v4555_v33  ;;  %3614 = vrcp.f32 %v2229_v28 }
 0x539   : > { %v2231_v20 = vpop.xlane.xlu0 %2230 }
 0x53b   : > { %3295 = vmatpush3.bf16.msra.mxu0 %v4555_v33  ;;  %v2233_v46 = vpop.xlane.xlu1 %2232 }
 0x53c   : > { %3296 = vmatprep.subr.bf16.mxu0 %v4557_v59  ;;  %3616 = vrcp.f32 %v2233_v46 }
 0x53d   : > { %3618 = vrcp.f32 %v2231_v20 }
 0x53f   : > { %3297 = vmatpush3.bf16.msra.mxu0 %v4557_v59  ;;  %v3564_v59 = vld [vmem:[#allocation13] sm:$0xff]  }
 0x540   : > { %v3613_v6 = vpop.eup %3612  ;;  %3298 = vmatprep.subr.bf16.mxu0 %v4559_v53  ;;  %3352 = vmatprep.subr.bf16.mxu1 %v3564_v59 }
 0x541   : > { %v2270_v13 = vmul.f32 %v3613_v6, %v4723_v17 }
 0x542   : > { %v3615_v11 = vpop.eup %3614 }
 0x543   : > { %3299 = vmatpush3.bf16.msra.mxu0 %v4559_v53  ;;  %v2271_v29 = vmul.f32 %v3615_v11, %v4726_v31 }
 0x544   : > { %3300 = vmatprep.subr.bf16.mxu0 %v4561_v30 }
 0x545   : > { %v2284_v33 = vpack.c.bf16 %v2271_v29, %v2270_v13 }
 0x546   : > { %v3617_v16 = vpop.eup %3616 }
 0x547   : > { %3301 = vmatpush3.bf16.msra.mxu0 %v4561_v30  ;;  %3308 = vmatprep.mubr.bf16.mxu0 %v2284_v33  ;;  %v3619_v53 = vpop.eup %3618  ;;  %v2273_v17 = vmul.f32 %v3617_v16, %v4732_v38  ;;  %v2907_v16 = vld [vmem:[%s4894_s8] ss:$0 sm:$0xff] }
 0x548   : > { %3302 = vmatprep.subr.bf16.mxu0 %v4563_v24  ;;  %v2272_v31 = vmul.f32 %v3619_v53, %v4729_v23 }
 0x54a   : > { %v2285_v30 = vpack.c.bf16 %v2273_v17, %v2272_v31 }
 0x54b   : > { %3303 = vmatpush3.bf16.msra.mxu0 %v4563_v24 }
 0x54c   : > { %3304 = vmatprep.subr.bf16.mxu0 %v4565_v8 }
 0x54f   : > { %3305 = vmatpush3.bf16.msra.mxu0 %v4565_v8 }
 0x550   : > { %3306 = vmatprep.subr.bf16.mxu0 %v4567_v50 }
 0x553   : > { %3307 = vmatpush3.bf16.msra.mxu0 %v4567_v50 }
 0x554   : > { %3332 = vmatprep.subr.bf16.mxu0 %v4592_v22 }
 0x556   : > { %3309 = vmatmul.mubr.bf16.vlgmr.msra.gmra.mrb[80].mxu0 %v2285_v30 }
 0x557   : > { %3333 = vmatpush3.bf16.msra.mxu0 %v4592_v22 }
 0x558   : > { %3334 = vmatprep.subr.bf16.mxu0 %v4601_v44 }
 0x55b   : > { %3335 = vmatpush3.bf16.msra.mxu0 %v4601_v44 }
 0x55c   : > { %3336 = vmatprep.subr.bf16.mxu0 %v4607_v52 }
 0x55f   : > { %3337 = vmatpush3.bf16.msra.mxu0 %v4607_v52 }
 0x560   : > { %3338 = vmatprep.subr.bf16.mxu0 %v4613_v7 }
 0x563   : > { %3339 = vmatpush3.bf16.msra.mxu0 %v4613_v7 }
 0x564   : > { %3340 = vmatprep.subr.bf16.mxu0 %v4619_v21 }
 0x567   : > { %3341 = vmatpush3.bf16.msra.mxu0 %v4619_v21 }
 0x568   : > { %3342 = vmatprep.subr.bf16.mxu0 %v4621_v36 }
 0x56b   : > { %3343 = vmatpush3.bf16.msra.mxu0 %v4621_v36 }
 0x56c   : > { %3344 = vmatprep.subr.bf16.mxu0 %v4623_v37 }
 0x56f   : > { %3345 = vmatpush3.bf16.msra.mxu0 %v4623_v37 }
 0x570   : > { %3346 = vmatprep.subr.bf16.mxu0 %v4625_v40 }
 0x573   : > { %3347 = vmatpush3.bf16.msra.mxu0 %v4625_v40 }
 0x575   : > { %v2235_v24 = vpop.xlane.xlu0 %2234 }
 0x576   : > { %3620 = vrcp.f32 %v2235_v24 }
 0x577   : > { %v2237_v8 = vpop.xlane.xlu1 %2236 }
 0x578   : > { %3622 = vrcp.f32 %v2237_v8 }
 0x579   : > { %v2239_v50 = vpop.xlane.xlu0 %2238 }
 0x57a   : > { %3624 = vrcp.f32 %v2239_v50 }
 0x57b   : > { %v2241_v22 = vpop.xlane.xlu1 %2240 }
 0x57c   : > { %3626 = vrcp.f32 %v2241_v22 }
 0x580   : > { %v3621_v44 = vpop.eup %3620 }
 0x581   : > { %v2274_v7 = vmul.f32 %v3621_v44, %v4739_v4  ;;  %v3568_v4 = vld [vmem:[#allocation13 + $0x20] sm:$0xff]  }
 0x582   : > { %v3623_v52 = vpop.eup %3622 }
 0x583   : > { %v2275_v21 = vmul.f32 %v3623_v52, %v4742_v55  ;;  %v3569_v55 = vld [vmem:[#allocation13 + $0x28] sm:$0xff]  }
 0x584   : > { %v3625_v36 = vpop.eup %3624 }
 0x585   : > { %v2286_v37 = vpack.c.bf16 %v2275_v21, %v2274_v7  ;;  %v2276_v40 = vmul.f32 %v3625_v36, %v4745_v60  ;;  %v3570_v60 = vld [vmem:[#allocation13 + $0x30] sm:$0xff]  }
 0x586   : > { %v3627_v23 = vpop.eup %3626 }
 0x587   : > { %3328 = vmatprep.mubr.bf16.mxu1 %v2286_v37  ;;  %v2277_v38 = vmul.f32 %v3627_v23, %v4748_v54  ;;  %v3571_v54 = vld [vmem:[#allocation13 + $0x38] sm:$0xff]  }
 0x589   : > { %v2287_v32 = vpack.c.bf16 %v2277_v38, %v2276_v40 }
 0x58b   : > { %3329 = vmatmul.mubr.bf16.vlgmr.msra.gmra.mrb[148].mxu1 %v2287_v32 }
 0x58c   : > { %3353 = vmatpush3.bf16.msra.mxu1 %v3564_v59 }
 0x58d   : > { %3354 = vmatprep.subr.bf16.mxu1 %v3565_v9 }
 0x590   : > { %3355 = vmatpush3.bf16.msra.mxu1 %v3565_v9 }
 0x591   : > { %3356 = vmatprep.subr.bf16.mxu1 %v3566_v45 }
 0x594   : > { %3357 = vmatpush3.bf16.msra.mxu1 %v3566_v45 }
 0x595   : > { %3358 = vmatprep.subr.bf16.mxu1 %v3567_v3 }
 0x598   : > { %3359 = vmatpush3.bf16.msra.mxu1 %v3567_v3 }
 0x599   : > { %3360 = vmatprep.subr.bf16.mxu1 %v3568_v4 }
 0x59c   : > { %3361 = vmatpush3.bf16.msra.mxu1 %v3568_v4 }
 0x59d   : > { %3362 = vmatprep.subr.bf16.mxu1 %v3569_v55 }
 0x5a0   : > { %3363 = vmatpush3.bf16.msra.mxu1 %v3569_v55 }
 0x5a1   : > { %3364 = vmatprep.subr.bf16.mxu1 %v3570_v60 }
 0x5a4   : > { %3365 = vmatpush3.bf16.msra.mxu1 %v3570_v60 }
 0x5a5   : > { %3366 = vmatprep.subr.bf16.mxu1 %v3571_v54 }
 0x5a8   : > { %3367 = vmatpush3.bf16.msra.mxu1 %v3571_v54 }
 0x5b5   : > { %v2243_v25 = vpop.xlane.xlu0 %2242 }
 0x5b6   : > { %3628 = vrcp.f32 %v2243_v25 }
 0x5b7   : > { %v2245_v12 = vpop.xlane.xlu1 %2244 }
 0x5b8   : > { %3630 = vrcp.f32 %v2245_v12 }
 0x5b9   : > { %v2247_v39 = vpop.xlane.xlu0 %2246 }
 0x5ba   : > { %3632 = vrcp.f32 %v2247_v39 }
 0x5bb   : > { %v2249_v5 = vpop.xlane.xlu1 %2248 }
 0x5bc   : > { %3634 = vrcp.f32 %v2249_v5 }
 0x5c0   : > { %v3629_v35 = vpop.eup %3628 }
 0x5c1   : > { %v2278_v58 = vmul.f32 %v3629_v35, %v4755_v15 }
 0x5c2   : > { %v3631_v48 = vpop.eup %3630 }
 0x5c3   : > { %v2279_v0 = vmul.f32 %v3631_v48, %v4758_v47 }
 0x5c4   : > { %v3633_v51 = vpop.eup %3632 }
 0x5c5   : > { %v2288_v18 = vpack.c.bf16 %v2279_v0, %v2278_v58  ;;  %v2280_v57 = vmul.f32 %v3633_v51, %v4761_v62 }
 0x5c6   : > { %v3635_v63 = vpop.eup %3634 }
 0x5c7   : > { %3348 = vmatprep.mubr.bf16.mxu0 %v2288_v18  ;;  %v2281_v43 = vmul.f32 %v3635_v63, %v4764_v26 }
 0x5c9   : > { %v2289_v56 = vpack.c.bf16 %v2281_v43, %v2280_v57 }
 0x5cb   : > { %3349 = vmatmul.mubr.bf16.vlgmr.msra.gmra.mrb[84].mxu0 %v2289_v56 }
 0x609   : > { %v3290_v34 = vpop.f32.mrb[76].mxu0 }
 0x60a   : > { %v2324_v42 = vpop.f32.mrb[77].mxu0 }
 0x60b   : > { %v3291_v49 = vpop.f32.mrb[78].mxu0 }
 0x60c   : > { %v2487_v1 = vpack.c.bf16 %v3291_v49, %v3290_v34  ;;  %v2327_v41 = vpop.f32.mrb[79].mxu0 }
 0x60d   : > { %v2486_v61 = vpack.c.bf16 %v2327_v41, %v2324_v42 }
 0x60f   : > { %3368 = vmatprep.mubr.bf16.mxu1 %v2486_v61 }
 0x610   : > { %3369 = vmatmul.mubr.bf16.vlgmr.msra.gmra.mrb[152].mxu1 %v2487_v1 }
 0x629   : > { %v3310_v15 = vpop.f32.mrb[80].mxu0 }
 0x62a   : > { %v2373_v47 = vpop.f32.mrb[81].mxu0 }
 0x62b   : > { %v3311_v10 = vpop.f32.mrb[82].mxu0 }
 0x62c   : > { %v2489_v14 = vpack.c.bf16 %v3311_v10, %v3310_v15  ;;  %v2376_v2 = vpop.f32.mrb[83].mxu0 }
 0x62d   : > { %v2488_v19 = vpack.c.bf16 %v2376_v2, %v2373_v47 }
 0x62f   : > { %3372 = vmatprep.mubr.bf16.mxu1 %v2488_v19 }
 0x630   : > { %3373 = vmatmul.mubr.bf16.gmra.mrb[156].mxu1 %v2489_v14 }
 0x65e   : > { %v3330_v62 = vpop.f32.mrb[148].mxu1 }
 0x65f   : > { %v2422_v26 = vpop.f32.mrb[149].mxu1 }
 0x660   : > { %v3331_v27 = vpop.f32.mrb[150].mxu1 }
 0x661   : > { %v2491_v28 = vpack.c.bf16 %v3331_v27, %v3330_v62  ;;  %v2425_v6 = vpop.f32.mrb[151].mxu1 }
 0x662   : > { %v2490_v46 = vpack.c.bf16 %v2425_v6, %v2422_v26 }
 0x664   : > { %3376 = vmatprep.mubr.bf16.mxu1 %v2490_v46 }
 0x665   : > { %3377 = vmatmul.mubr.bf16.gmra.mrb[160].mxu1 %v2491_v28 }
 0x69e   : > { %v3350_v11 = vpop.f32.mrb[84].mxu0 }
 0x69f   : > { %v2471_v20 = vpop.f32.mrb[85].mxu0 }
 0x6a0   : > { %v3351_v13 = vpop.f32.mrb[86].mxu0 }
 0x6a1   : > { %v2493_v29 = vpack.c.bf16 %v3351_v13, %v3350_v11  ;;  %v2474_v33 = vpop.f32.mrb[87].mxu0 }
 0x6a2   : > { %v2492_v59 = vpack.c.bf16 %v2474_v33, %v2471_v20 }
 0x6a4   : > { %3380 = vmatprep.mubr.bf16.mxu1 %v2492_v59 }
 0x6a5   : > { %3381 = vmatmul.mubr.bf16.gmra.mrb[164].mxu1 %v2493_v29 }
 0x6e3   : > { %v3370_v53 = vpop.f32.mrb[152].mxu1 }
 0x6e4   : > { %v2591_v17 = vadd.f32 %v3370_v53, %v2907_v16  ;;  %v2582_v31 = vpop.f32.mrb[153].mxu1 }
 0x6e5   : > { %v2583_v30 = vadd.f32 %v2907_v16, %v2582_v31  ;;  %v3371_v24 = vpop.f32.mrb[154].mxu1 }
 0x6e6   : > { %2647 = vst [vmem:[%s4818_s28 + $0x10] sm:$0xff] %v2591_v17  ;;  %v2594_v8 = vadd.f32 %v3371_v24, %v2907_v16  ;;  %v2585_v50 = vpop.f32.mrb[155].mxu1 }
 0x6e7   : > { %2645 = vst [vmem:[%s4818_s28] sm:$0xff] %v2583_v30  ;;  %v2586_v22 = vadd.f32 %v2907_v16, %v2585_v50 }
 0x6e8   : > { %2648 = vst [vmem:[%s4818_s28 + $0x18] sm:$0xff] %v2594_v8 }
 0x6e9   : > { %2646 = vst [vmem:[%s4818_s28 + $0x8] sm:$0xff] %v2586_v22 }
 0x703   : > { %v3374_v44 = vpop.f32.mrb[156].mxu1 }
 0x704   : > { %v2607_v52 = vadd.f32 %v3374_v44, %v2907_v16  ;;  %v2598_v7 = vpop.f32.mrb[157].mxu1 }
 0x705   : > { %v2599_v21 = vadd.f32 %v2907_v16, %v2598_v7  ;;  %v3375_v36 = vpop.f32.mrb[158].mxu1 }
 0x706   : > { %2651 = vst [vmem:[%s4818_s28 + $0x30] sm:$0xff] %v2607_v52  ;;  %v2610_v37 = vadd.f32 %v3375_v36, %v2907_v16  ;;  %v2601_v23 = vpop.f32.mrb[159].mxu1 }
 0x707   : > { %2649 = vst [vmem:[%s4818_s28 + $0x20] sm:$0xff] %v2599_v21  ;;  %v2602_v40 = vadd.f32 %v2907_v16, %v2601_v23 }
 0x708   : > { %2652 = vst [vmem:[%s4818_s28 + $0x38] sm:$0xff] %v2610_v37 }
 0x709   : > { %2650 = vst [vmem:[%s4818_s28 + $0x28] sm:$0xff] %v2602_v40 }
 0x738   : > { %v3378_v38 = vpop.f32.mrb[160].mxu1 }
 0x739   : > { %v2623_v32 = vadd.f32 %v3378_v38, %v2907_v16  ;;  %v2614_v9 = vpop.f32.mrb[161].mxu1 }
 0x73a   : > { %v2615_v45 = vadd.f32 %v2907_v16, %v2614_v9  ;;  %v3379_v3 = vpop.f32.mrb[162].mxu1 }
 0x73b   : > { %2655 = vst [vmem:[%s4818_s28 + $0x50] sm:$0xff] %v2623_v32  ;;  %v2626_v4 = vadd.f32 %v3379_v3, %v2907_v16  ;;  %v2617_v55 = vpop.f32.mrb[163].mxu1 }
 0x73c   : > { %2653 = vst [vmem:[%s4818_s28 + $0x40] sm:$0xff] %v2615_v45  ;;  %v2618_v60 = vadd.f32 %v2907_v16, %v2617_v55 }
 0x73d   : > { %2656 = vst [vmem:[%s4818_s28 + $0x58] sm:$0xff] %v2626_v4 }
 0x73e   : > { %2654 = vst [vmem:[%s4818_s28 + $0x48] sm:$0xff] %v2618_v60 }
 0x778   : > { %v3382_v54 = vpop.f32.mrb[164].mxu1 }
 0x779   : > { %v2639_v25 = vadd.f32 %v3382_v54, %v2907_v16  ;;  %v2630_v12 = vpop.f32.mrb[165].mxu1 }
 0x77a   : > { %v2631_v39 = vadd.f32 %v2907_v16, %v2630_v12  ;;  %v3383_v5 = vpop.f32.mrb[166].mxu1 }
 0x77b   : > { %2659 = vst [vmem:[%s4818_s28 + $0x70] sm:$0xff] %v2639_v25  ;;  %v2642_v35 = vadd.f32 %v3383_v5, %v2907_v16  ;;  %v2633_v48 = vpop.f32.mrb[167].mxu1 }
 0x77c   : > { %2657 = vst [vmem:[%s4818_s28 + $0x60] sm:$0xff] %v2631_v39  ;;  %v2634_v58 = vadd.f32 %v2907_v16, %v2633_v48 }
 0x77d   : > { %2660 = vst [vmem:[%s4818_s28 + $0x78] sm:$0xff] %v2642_v35 }
 0x77e   : > { %2658 = vst [vmem:[%s4818_s28 + $0x68] sm:$0xff] %v2634_v58 }
 0x77f   : > { %3831 = shalt.err (!%p3828_p11)
}
 0x780   : > { %s3832_s11 = scalar_lea.hbm %s4838_s24, 2048  ;;  %s3836_s30 = scalar_lea.hbm %s4895_s9, 8192 }
 0x781   : > { %p3833_p13 = scmp.ne.s32.totalorder %s4838_s24, %s3832_s11  ;;  %p3837_p4 = scmp.lt.u32.totalorder %s4838_s24, %s4895_s9 }
 0x782   : > { %p3838_p5 = scmp.lt.u32.totalorder %s3836_s30, %s3832_s11  ;;  %p3840_p2 = scmp.lt.u32.totalorder %s3832_s11, %s4838_s24 }
 0x783   : > { %p3834_p10 = pnand %p3833_p13, %p4148_p3 }
 0x784   : > { %p3839_p1 = por %p3838_p5, %p3837_p4 }
 0x785   : > { %p3835_p0 = pneg %p3834_p10 }
 0x786   : > { %p3841_p7 = por %p3840_p2, %p3839_p1 }
 0x788   : > { %p3842_p9 = pnand %p3841_p7, %p3835_p0 }
 0x78a   : > { %3845 = shalt.err (!%p3842_p9)
}
 0x78b   : > { %s3917_s5 = smov 128   ;;  %s3918_s3 = smov 8  }
 0x78c   : > { %3404 = dma.vmem_to_hbm [thread:$0]  (%p4148_p3), %s4840_s26, 2048, %s4838_s24, %s2662_s0, %s3917_s5, %s3917_s5, %s3918_s3  }
 0x78d PF: > { %s4936_s28 = sld [smem:[#allocation23_spill]]  ;;  %s4937_s1 = sld [smem:[#allocation24_spill]] }
 0x78e   : > { %p3439_p6 = scmp.ge.s32.totalorder %s3902_s22, 2 }
 0x793   : > { %s2691_s10 = sand.u32 1, %s4936_s28   ;;  %p4938_p8 = scmp.ne.s32.totalorder %s4937_s1, 0 }
 0x794   : > { %s2692_s19 = scalar_lea.sflag [#allocation6], %s2691_s10 }
 0x795   : > { %p3427_p12 = pnand %p3439_p6, %p4938_p8 }
 0x797   : > { %3885 = dma.done.wait (!%p3427_p12), %s2692_s19, 2048  }
 0x798   : > { %3887 = vsyncadd (!%p3427_p12), %s2692_s19, 4294965248  ;;  %p31_p11 = scmp.ge.s32.totalorder %s4138_s18, 6   ;;  %s4939_s19 = smov %s3894_s20 }
 0x799   : > { %s4940_s20 = smov %s3898_s21  ;;  %s4941_s21 = smov %s4154_s15 }
 0x79a   : > { %s4942_s22 = smov %s4138_s18  ;;  %33 = sbr.rel (!%p31_p11) target bundleno = 22 (0x16), region = 126 }
 0x7a1   :  { %2697 = vsyncpa [#allocation5], 1 }
 0x7a2   :  { %2699 = vsyncpa [#allocation5 + $0x1], 1 }
 0x7a3   :  { %2700 = vsyncpa [#allocation8], 1 }
 0x7a4   :  { %2702 = vsyncpa [#allocation8 + $0x1], 1 }
 0x7a5   :  { %2703 = vsyncpa [#allocation11], 1 }
 0x7a6   :  { %2704 = vsyncpa [#allocation14], 1 }
 0x7a7   :  { %2705 = vsyncpa [#allocation6], 1 }
 0x7a8   :  { %2707 = vsyncpa [#allocation6 + $0x1], 1 }

</bundles_post_ra>
